<compile_context>
chip_gen: v7x
topology: tpu7x:2x2x1
jax: 0.10.0
libtpu: 0.0.40
codegen_flags: <defaults>
</compile_context>

<pallas_src>
import functools

import jax
import jax.numpy as jnp
from jax.experimental import pallas as pl
from jax.experimental.pallas import tpu as pltpu


def _round_up(x, m):
    return ((x + m - 1) // m) * m


# --------------------------------------------------------------------------
# Layer 1: GINConv + outer ReLU, node features out.
# --------------------------------------------------------------------------
def _gin_layer_kernel(adj_ref, x_src_ref,
                      wa_ref, ba_ref, wb_ref, bb_ref,
                      out_ref, acc_ref):
    i = pl.program_id(0)
    k = pl.program_id(1)

    @pl.when(k == 0)
    def _():
        acc_ref[...] = jnp.zeros_like(acc_ref)

    # Neighbor-sum aggregation: adj tile (bf16 -> f32, exact) @ source rows.
    acc_ref[...] += jnp.dot(adj_ref[...].astype(jnp.float32), x_src_ref[...],
                            preferred_element_type=jnp.float32)

    # Self term (1+eps)*x_i with eps == 0: the diagonal source block holds
    # exactly the rows of this row block, so no separate "self" input stream.
    @pl.when(k == i)
    def _():
        acc_ref[...] += x_src_ref[...]

    @pl.when(k == pl.num_programs(1) - 1)
    def _():
        h = acc_ref[...]
        h = jnp.maximum(
            jnp.dot(h, wa_ref[...], preferred_element_type=jnp.float32)
            + ba_ref[...], 0.0)                      # MLP inner ReLU
        h = jnp.maximum(
            jnp.dot(h, wb_ref[...], preferred_element_type=jnp.float32)
            + bb_ref[...], 0.0)                      # outer F.relu
        out_ref[...] = h


# --------------------------------------------------------------------------
# Layer 2: GINConv + outer ReLU + fused global_mean_pool epilogue.
# --------------------------------------------------------------------------
def _gin_layer_pool_kernel(adj_ref, h_src_ref, pool_ref,
                           wa_ref, ba_ref, wb_ref, bb_ref,
                           out_ref, acc_ref, pool_acc_ref):
    i = pl.program_id(0)
    k = pl.program_id(1)
    last_i = pl.num_programs(0) - 1
    last_k = pl.num_programs(1) - 1

    @pl.when(jnp.logical_and(i == 0, k == 0))
    def _():
        pool_acc_ref[...] = jnp.zeros_like(pool_acc_ref)

    @pl.when(k == 0)
    def _():
        acc_ref[...] = jnp.zeros_like(acc_ref)

    acc_ref[...] += jnp.dot(adj_ref[...].astype(jnp.float32), h_src_ref[...],
                            preferred_element_type=jnp.float32)

    @pl.when(k == i)
    def _():
        acc_ref[...] += h_src_ref[...]

    @pl.when(k == last_k)
    def _():
        g = acc_ref[...]
        g = jnp.maximum(
            jnp.dot(g, wa_ref[...], preferred_element_type=jnp.float32)
            + ba_ref[...], 0.0)
        g = jnp.maximum(
            jnp.dot(g, wb_ref[...], preferred_element_type=jnp.float32)
            + bb_ref[...], 0.0)
        # Fused mean pool: pool tile [G, TM] @ g [TM, H], summed over row blocks.
        pool_acc_ref[...] += jnp.dot(pool_ref[...], g,
                                     preferred_element_type=jnp.float32)

    @pl.when(jnp.logical_and(i == last_i, k == last_k))
    def _():
        out_ref[...] = pool_acc_ref[...]


# --------------------------------------------------------------------------
# Wrapper
# --------------------------------------------------------------------------
@functools.partial(jax.jit, static_argnames=("num_graphs",))
def gin_encoder(x, edge_index, batch, params, num_graphs):
    """x: [N, Din] f32; edge_index: [2, E] i32; batch: [N] i32 graph ids."""
    n, din = x.shape
    hidden = params["w1b"].shape[1]

    # --- padded / tiled sizes -------------------------------------------------
    n_pad = _round_up(n, 128)
    if n_pad > 512:
        tile = 512
        n_pad = _round_up(n, tile)
    else:
        tile = n_pad
    din_pad = _round_up(din, 128)
    h_pad = _round_up(hidden, 128)
    g_pad = _round_up(num_graphs, 8)
    n_blocks = n_pad // tile

    # --- glue: dense adjacency (bf16, target-row/source-col) and mean-pool ----
    src, dst = edge_index[0], edge_index[1]
    adj = jnp.zeros((n_pad, n_pad), jnp.float32).at[dst, src].add(1.0)
    adj = adj.astype(jnp.bfloat16)  # small integer counts -> exact in bf16

    one_hot = (batch[None, :] == jnp.arange(num_graphs)[:, None]).astype(jnp.float32)
    counts = jnp.maximum(one_hot.sum(axis=1, keepdims=True), 1.0)
    pool = one_hot / counts                                             # [G, N]
    pool = jnp.pad(pool, ((0, g_pad - num_graphs), (0, n_pad - n)))

    x_p = jnp.pad(x, ((0, n_pad - n), (0, din_pad - din)))

    def pad2(w, r, c):
        return jnp.pad(w, ((0, r - w.shape[0]), (0, c - w.shape[1])))

    w1a = pad2(params["w1a"], din_pad, h_pad)
    b1a = pad2(params["b1a"], 1, h_pad)
    w1b = pad2(params["w1b"], h_pad, h_pad)
    b1b = pad2(params["b1b"], 1, h_pad)
    w2a = pad2(params["w2a"], h_pad, h_pad)
    b2a = pad2(params["b2a"], 1, h_pad)
    w2b = pad2(params["w2b"], h_pad, h_pad)
    b2b = pad2(params["b2b"], 1, h_pad)

    const = lambda i, k: (0, 0)

    # ---------------- layer 1 --------------------------------------------------
    flops1 = 2 * n_pad * n_pad * din_pad + 2 * n_pad * din_pad * h_pad \
        + 2 * n_pad * h_pad * h_pad
    bytes1 = 2 * n_pad * n_pad + 4 * (n_pad * din_pad + din_pad * h_pad
                                      + h_pad * h_pad + n_pad * h_pad)
    h = pl.pallas_call(
        _gin_layer_kernel,
        out_shape=jax.ShapeDtypeStruct((n_pad, h_pad), jnp.float32),
        grid_spec=pltpu.PrefetchScalarGridSpec(
            num_scalar_prefetch=0,
            grid=(n_blocks, n_blocks),
            in_specs=[
                pl.BlockSpec((tile, tile), lambda i, k: (i, k)),      # adj
                pl.BlockSpec((tile, din_pad), lambda i, k: (k, 0)),   # x (sources)
                pl.BlockSpec((din_pad, h_pad), const),                # w1a
                pl.BlockSpec((1, h_pad), const),                      # b1a
                pl.BlockSpec((h_pad, h_pad), const),                  # w1b
                pl.BlockSpec((1, h_pad), const),                      # b1b
            ],
            out_specs=pl.BlockSpec((tile, h_pad), lambda i, k: (i, 0)),
            scratch_shapes=[pltpu.VMEM((tile, din_pad), jnp.float32)],
        ),
        compiler_params=pltpu.CompilerParams(
            dimension_semantics=("parallel", "arbitrary")),
        cost_estimate=pl.CostEstimate(flops=flops1, transcendentals=0,
                                      bytes_accessed=bytes1),
    )(adj, x_p, w1a, b1a, w1b, b1b)

    # ---------------- layer 2 + fused mean pool --------------------------------
    flops2 = 2 * n_pad * n_pad * h_pad + 4 * n_pad * h_pad * h_pad \
        + 2 * g_pad * n_pad * h_pad
    bytes2 = 2 * n_pad * n_pad + 4 * (n_pad * h_pad + 2 * h_pad * h_pad
                                      + g_pad * n_pad + g_pad * h_pad)
    pooled = pl.pallas_call(
        _gin_layer_pool_kernel,
        out_shape=jax.ShapeDtypeStruct((g_pad, h_pad), jnp.float32),
        grid_spec=pltpu.PrefetchScalarGridSpec(
            num_scalar_prefetch=0,
            grid=(n_blocks, n_blocks),
            in_specs=[
                pl.BlockSpec((tile, tile), lambda i, k: (i, k)),      # adj
                pl.BlockSpec((tile, h_pad), lambda i, k: (k, 0)),     # h (sources)
                pl.BlockSpec((g_pad, tile), lambda i, k: (0, i)),     # pool
                pl.BlockSpec((h_pad, h_pad), const),                  # w2a
                pl.BlockSpec((1, h_pad), const),                      # b2a
                pl.BlockSpec((h_pad, h_pad), const),                  # w2b
                pl.BlockSpec((1, h_pad), const),                      # b2b
            ],
            out_specs=pl.BlockSpec((g_pad, h_pad), lambda i, k: (0, 0)),
            scratch_shapes=[pltpu.VMEM((tile, h_pad), jnp.float32),
                            pltpu.VMEM((g_pad, h_pad), jnp.float32)],
        ),
        compiler_params=pltpu.CompilerParams(
            dimension_semantics=("arbitrary", "arbitrary")),
        cost_estimate=pl.CostEstimate(flops=flops2, transcendentals=0,
                                      bytes_accessed=bytes2),
    )(adj, h, pool, w2a, b2a, w2b, b2b)

    return pooled[:num_graphs, :hidden]


# --------------------------------------------------------------------------
# Params + pure-JAX reference
# --------------------------------------------------------------------------
def init_params(key, input_dim, hidden_dim):
    """Linear weights stored as (in, out); bias as (1, out)."""
    ks = jax.random.split(key, 4)
    scale = 0.1
    return {
        "w1a": scale * jax.random.normal(ks[0], (input_dim, hidden_dim), jnp.float32),
        "b1a": jnp.zeros((1, hidden_dim), jnp.float32),
        "w1b": scale * jax.random.normal(ks[1], (hidden_dim, hidden_dim), jnp.float32),
        "b1b": jnp.zeros((1, hidden_dim), jnp.float32),
        "w2a": scale * jax.random.normal(ks[2], (hidden_dim, hidden_dim), jnp.float32),
        "b2a": jnp.zeros((1, hidden_dim), jnp.float32),
        "w2b": scale * jax.random.normal(ks[3], (hidden_dim, hidden_dim), jnp.float32),
        "b2b": jnp.zeros((1, hidden_dim), jnp.float32),
    }


def _reference(x, edge_index, batch, params, num_graphs):
    n = x.shape[0]
    src, dst = edge_index[0], edge_index[1]
    adj = jnp.zeros((n, n), jnp.float32).at[dst, src].add(1.0)

    def conv(h, wa, ba, wb, bb):
        z = h + adj @ h
        z = jnp.maximum(z @ wa + ba, 0.0)
        z = z @ wb + bb
        return jnp.maximum(z, 0.0)

    h = conv(x, params["w1a"], params["b1a"], params["w1b"], params["b1b"])
    g = conv(h, params["w2a"], params["b2a"], params["w2b"], params["b2b"])
    one_hot = (batch[None, :] == jnp.arange(num_graphs)[:, None]).astype(jnp.float32)
    counts = jnp.maximum(one_hot.sum(axis=1, keepdims=True), 1.0)
    return (one_hot / counts) @ g


if __name__ == "__main__":
    key = jax.random.PRNGKey(0)
    k_feat, k_edge, k_param = jax.random.split(key, 3)

    num_nodes = 32
    num_edges = 64
    input_dim = 16
    hidden_dim = 32
    num_graphs = 4

    x = jax.random.normal(k_feat, (num_nodes, input_dim), jnp.float32)
    edge_index = jax.random.randint(k_edge, (2, num_edges), 0, num_nodes, jnp.int32)
    batch = jnp.repeat(jnp.arange(num_graphs, dtype=jnp.int32),
                       num_nodes // num_graphs)

    params = init_params(k_param, input_dim, hidden_dim)

    out = gin_encoder(x, edge_index, batch, params, num_graphs)
    jax.block_until_ready(out)
    assert out.shape == (num_graphs, hidden_dim)

    ref = _reference(x, edge_index, batch, params, num_graphs)
    assert bool(jnp.allclose(out, ref, atol=1e-2, rtol=1e-2))
    print("KERNEL_OK")
</pallas_src>

<mosaic_0001>
module attributes {stable_mosaic.version = 11 : i64} {
  func.func private @main(%arg0: i32) attributes {dimension_semantics = [#tpu.dimension_semantics<core_parallel>], iteration_bounds = array<i64: 2>, tpu.core_type = #tpu.core_type<sc_scalar_subcore>, window_params = []} {
    return
  }
}

module attributes {stable_mosaic.version = 11 : i64} {
  func.func private @main(%arg0: i32) attributes {dimension_semantics = [#tpu.dimension_semantics<core_parallel>], iteration_bounds = array<i64: 2>, tpu.core_type = #tpu.core_type<sc_scalar_subcore>, window_params = []} {
    return
  }
}

module attributes {stable_mosaic.version = 11 : i64} {
  func.func @_gin_layer_kernel(%arg0: i32, %arg1: i32, %arg2: memref<128x128xbf16, #tpu.memory_space<vmem>>, %arg3: memref<128x128xf32, #tpu.memory_space<vmem>>, %arg4: memref<128x128xf32, #tpu.memory_space<vmem>>, %arg5: memref<1x128xf32, #tpu.memory_space<vmem>>, %arg6: memref<128x128xf32, #tpu.memory_space<vmem>>, %arg7: memref<1x128xf32, #tpu.memory_space<vmem>>, %arg8: memref<128x128xf32, #tpu.memory_space<vmem>>, %arg9: memref<128x128xf32, #tpu.memory_space<vmem>>) attributes {dimension_semantics = [#tpu.dimension_semantics<parallel>, #tpu.dimension_semantics<arbitrary>], iteration_bounds = array<i64: 1, 1>, scalar_prefetch = 0 : i64, scratch_operands = 1 : i64, tpu.core_type = #tpu.core_type<tc>, window_params = [{transform_indices = @transform_0, window_bounds = array<i64: 128, 128>}, {transform_indices = @transform_1, window_bounds = array<i64: 128, 128>}, {pipeline_mode = #tpu.pipeline_mode<synchronous>, transform_indices = @transform_2, window_bounds = array<i64: 128, 128>}, {pipeline_mode = #tpu.pipeline_mode<synchronous>, transform_indices = @transform_3, window_bounds = array<i64: 1, 128>}, {pipeline_mode = #tpu.pipeline_mode<synchronous>, transform_indices = @transform_4, window_bounds = array<i64: 128, 128>}, {pipeline_mode = #tpu.pipeline_mode<synchronous>, transform_indices = @transform_5, window_bounds = array<i64: 1, 128>}, {transform_indices = @transform_6, window_bounds = array<i64: 128, 128>}]} {
    %c0_i32 = arith.constant 0 : i32
    %0 = arith.cmpi eq, %arg1, %c0_i32 : i32
    %1 = arith.extui %0 : i1 to i32
    %c0_i32_0 = arith.constant 0 : i32
    %2 = arith.cmpi ne, %1, %c0_i32_0 : i32
    scf.if %2 {
      %cst_11 = arith.constant 0.000000e+00 : f32
      %16 = vector.broadcast %cst_11 : f32 to vector<128x128xf32>
      %c0_12 = arith.constant 0 : index
      %c0_13 = arith.constant 0 : index
      %17 = vector.load %arg9[%c0_12, %c0_13] : memref<128x128xf32, #tpu.memory_space<vmem>>, vector<128x128xf32>
      tpu.vector_store %arg9[%c0_12, %c0_13], %16 {strides = array<i32>} : memref<128x128xf32, #tpu.memory_space<vmem>>, vector<128x128xf32>,
    } else {
    }
    %c0 = arith.constant 0 : index
    %c0_1 = arith.constant 0 : index
    %3 = vector.load %arg9[%c0, %c0_1] : memref<128x128xf32, #tpu.memory_space<vmem>>, vector<128x128xf32>
    %c0_2 = arith.constant 0 : index
    %c0_3 = arith.constant 0 : index
    %4 = vector.load %arg2[%c0_2, %c0_3] : memref<128x128xbf16, #tpu.memory_space<vmem>>, vector<128x128xbf16>
    %5 = arith.extf %4 : vector<128x128xbf16> to vector<128x128xf32>
    %c0_4 = arith.constant 0 : index
    %c0_5 = arith.constant 0 : index
    %6 = vector.load %arg3[%c0_4, %c0_5] : memref<128x128xf32, #tpu.memory_space<vmem>>, vector<128x128xf32>
    %cst = arith.constant dense<0.000000e+00> : vector<128x128xf32>
    %7 = tpu.matmul %5, %6, %cst {dimension_numbers = #tpu.dot_dimension_numbers<[1], [0], [0], [1], [0, 0, 1, 1], [], []>} : vector<128x128xf32>, vector<128x128xf32>, vector<128x128xf32> -> vector<128x128xf32>
    %8 = arith.addf %3, %7 : vector<128x128xf32>
    %c0_6 = arith.constant 0 : index
    %c0_7 = arith.constant 0 : index
    %9 = vector.load %arg9[%c0_6, %c0_7] : memref<128x128xf32, #tpu.memory_space<vmem>>, vector<128x128xf32>
    tpu.vector_store %arg9[%c0_6, %c0_7], %8 {strides = array<i32>} : memref<128x128xf32, #tpu.memory_space<vmem>>, vector<128x128xf32>,
    %10 = arith.cmpi eq, %arg1, %arg0 : i32
    %11 = arith.extui %10 : i1 to i32
    %c0_i32_8 = arith.constant 0 : i32
    %12 = arith.cmpi ne, %11, %c0_i32_8 : i32
    scf.if %12 {
      %c0_11 = arith.constant 0 : index
      %c0_12 = arith.constant 0 : index
      %16 = vector.load %arg9[%c0_11, %c0_12] : memref<128x128xf32, #tpu.memory_space<vmem>>, vector<128x128xf32>
      %c0_13 = arith.constant 0 : index
      %c0_14 = arith.constant 0 : index
      %17 = vector.load %arg3[%c0_13, %c0_14] : memref<128x128xf32, #tpu.memory_space<vmem>>, vector<128x128xf32>
      %18 = arith.addf %16, %17 : vector<128x128xf32>
      %c0_15 = arith.constant 0 : index
      %c0_16 = arith.constant 0 : index
      %19 = vector.load %arg9[%c0_15, %c0_16] : memref<128x128xf32, #tpu.memory_space<vmem>>, vector<128x128xf32>
      tpu.vector_store %arg9[%c0_15, %c0_16], %18 {strides = array<i32>} : memref<128x128xf32, #tpu.memory_space<vmem>>, vector<128x128xf32>,
    } else {
    }
    %c0_i32_9 = arith.constant 0 : i32
    %13 = arith.cmpi eq, %arg1, %c0_i32_9 : i32
    %14 = arith.extui %13 : i1 to i32
    %c0_i32_10 = arith.constant 0 : i32
    %15 = arith.cmpi ne, %14, %c0_i32_10 : i32
    scf.if %15 {
      %c0_11 = arith.constant 0 : index
      %c0_12 = arith.constant 0 : index
      %16 = vector.load %arg9[%c0_11, %c0_12] : memref<128x128xf32, #tpu.memory_space<vmem>>, vector<128x128xf32>
      %c0_13 = arith.constant 0 : index
      %c0_14 = arith.constant 0 : index
      %17 = vector.load %arg4[%c0_13, %c0_14] : memref<128x128xf32, #tpu.memory_space<vmem>>, vector<128x128xf32>
      %cst_15 = arith.constant dense<0.000000e+00> : vector<128x128xf32>
      %18 = tpu.matmul %16, %17, %cst_15 {dimension_numbers = #tpu.dot_dimension_numbers<[1], [0], [0], [1], [0, 0, 1, 1], [], []>} : vector<128x128xf32>, vector<128x128xf32>, vector<128x128xf32> -> vector<128x128xf32>
      %c0_16 = arith.constant 0 : index
      %c0_17 = arith.constant 0 : index
      %19 = vector.load %arg5[%c0_16, %c0_17] : memref<1x128xf32, #tpu.memory_space<vmem>>, vector<1x128xf32>
      %20 = vector.broadcast %19 : vector<1x128xf32> to vector<128x128xf32>
      %21 = arith.addf %18, %20 : vector<128x128xf32>
      %cst_18 = arith.constant 0.000000e+00 : f32
      %22 = vector.broadcast %cst_18 : f32 to vector<128x128xf32>
      %23 = arith.maximumf %21, %22 : vector<128x128xf32>
      %c0_19 = arith.constant 0 : index
      %c0_20 = arith.constant 0 : index
      %24 = vector.load %arg6[%c0_19, %c0_20] : memref<128x128xf32, #tpu.memory_space<vmem>>, vector<128x128xf32>
      %cst_21 = arith.constant dense<0.000000e+00> : vector<128x128xf32>
      %25 = tpu.matmul %23, %24, %cst_21 {dimension_numbers = #tpu.dot_dimension_numbers<[1], [0], [0], [1], [0, 0, 1, 1], [], []>} : vector<128x128xf32>, vector<128x128xf32>, vector<128x128xf32> -> vector<128x128xf32>
      %c0_22 = arith.constant 0 : index
      %c0_23 = arith.constant 0 : index
      %26 = vector.load %arg7[%c0_22, %c0_23] : memref<1x128xf32, #tpu.memory_space<vmem>>, vector<1x128xf32>
      %27 = vector.broadcast %26 : vector<1x128xf32> to vector<128x128xf32>
      %28 = arith.addf %25, %27 : vector<128x128xf32>
      %cst_24 = arith.constant 0.000000e+00 : f32
      %29 = vector.broadcast %cst_24 : f32 to vector<128x128xf32>
      %30 = arith.maximumf %28, %29 : vector<128x128xf32>
      %c0_25 = arith.constant 0 : index
      %c0_26 = arith.constant 0 : index
      %31 = vector.load %arg8[%c0_25, %c0_26] : memref<128x128xf32, #tpu.memory_space<vmem>>, vector<128x128xf32>
      tpu.vector_store %arg8[%c0_25, %c0_26], %30 {strides = array<i32>} : memref<128x128xf32, #tpu.memory_space<vmem>>, vector<128x128xf32>,
    } else {
    }
    return
  }
  func.func @transform_0(%arg0: i32, %arg1: i32) -> (i32, i32) {
    %c0_i32 = arith.constant 0 : i32
    return %arg0, %arg1 : i32, i32
  }
  func.func @transform_1(%arg0: i32, %arg1: i32) -> (i32, i32) {
    %c0_i32 = arith.constant 0 : i32
    %c0_i32_0 = arith.constant 0 : i32
    return %arg1, %c0_i32 : i32, i32
  }
  func.func @transform_2(%arg0: i32, %arg1: i32) -> (i32, i32) {
    %c0_i32 = arith.constant 0 : i32
    %c0_i32_0 = arith.constant 0 : i32
    %c0_i32_1 = arith.constant 0 : i32
    return %c0_i32, %c0_i32_0 : i32, i32
  }
  func.func @transform_3(%arg0: i32, %arg1: i32) -> (i32, i32) {
    %c0_i32 = arith.constant 0 : i32
    %c0_i32_0 = arith.constant 0 : i32
    %c0_i32_1 = arith.constant 0 : i32
    return %c0_i32, %c0_i32_0 : i32, i32
  }
  func.func @transform_4(%arg0: i32, %arg1: i32) -> (i32, i32) {
    %c0_i32 = arith.constant 0 : i32
    %c0_i32_0 = arith.constant 0 : i32
    %c0_i32_1 = arith.constant 0 : i32
    return %c0_i32, %c0_i32_0 : i32, i32
  }
  func.func @transform_5(%arg0: i32, %arg1: i32) -> (i32, i32) {
    %c0_i32 = arith.constant 0 : i32
    %c0_i32_0 = arith.constant 0 : i32
    %c0_i32_1 = arith.constant 0 : i32
    return %c0_i32, %c0_i32_0 : i32, i32
  }
  func.func @transform_6(%arg0: i32, %arg1: i32) -> (i32, i32) {
    %c0_i32 = arith.constant 0 : i32
    %c0_i32_0 = arith.constant 0 : i32
    return %arg0, %c0_i32 : i32, i32
  }
}

module attributes {stable_mosaic.version = 11 : i64} {
  func.func @_gin_layer_pool_kernel(%arg0: i32, %arg1: i32, %arg2: memref<128x128xbf16, #tpu.memory_space<vmem>>, %arg3: memref<128x128xf32, #tpu.memory_space<vmem>>, %arg4: memref<8x128xf32, #tpu.memory_space<vmem>>, %arg5: memref<128x128xf32, #tpu.memory_space<vmem>>, %arg6: memref<1x128xf32, #tpu.memory_space<vmem>>, %arg7: memref<128x128xf32, #tpu.memory_space<vmem>>, %arg8: memref<1x128xf32, #tpu.memory_space<vmem>>, %arg9: memref<8x128xf32, #tpu.memory_space<vmem>>, %arg10: memref<128x128xf32, #tpu.memory_space<vmem>>, %arg11: memref<8x128xf32, #tpu.memory_space<vmem>>) attributes {dimension_semantics = [#tpu.dimension_semantics<arbitrary>, #tpu.dimension_semantics<arbitrary>], iteration_bounds = array<i64: 1, 1>, scalar_prefetch = 0 : i64, scratch_operands = 2 : i64, tpu.core_type = #tpu.core_type<tc>, window_params = [{transform_indices = @transform_0, window_bounds = array<i64: 128, 128>}, {transform_indices = @transform_1, window_bounds = array<i64: 128, 128>}, {transform_indices = @transform_2, window_bounds = array<i64: 8, 128>}, {pipeline_mode = #tpu.pipeline_mode<synchronous>, transform_indices = @transform_3, window_bounds = array<i64: 128, 128>}, {pipeline_mode = #tpu.pipeline_mode<synchronous>, transform_indices = @transform_4, window_bounds = array<i64: 1, 128>}, {pipeline_mode = #tpu.pipeline_mode<synchronous>, transform_indices = @transform_5, window_bounds = array<i64: 128, 128>}, {pipeline_mode = #tpu.pipeline_mode<synchronous>, transform_indices = @transform_6, window_bounds = array<i64: 1, 128>}, {pipeline_mode = #tpu.pipeline_mode<synchronous>, transform_indices = @transform_7, window_bounds = array<i64: 8, 128>}]} {
    %c0_i32 = arith.constant 0 : i32
    %0 = arith.cmpi eq, %arg0, %c0_i32 : i32
    %c0_i32_0 = arith.constant 0 : i32
    %1 = arith.cmpi eq, %arg1, %c0_i32_0 : i32
    %2 = arith.andi %0, %1 : i1
    %3 = arith.extui %2 : i1 to i32
    %c0_i32_1 = arith.constant 0 : i32
    %4 = arith.cmpi ne, %3, %c0_i32_1 : i32
    scf.if %4 {
      %cst_17 = arith.constant 0.000000e+00 : f32
      %26 = vector.broadcast %cst_17 : f32 to vector<8x128xf32>
      %c0_18 = arith.constant 0 : index
      %c0_19 = arith.constant 0 : index
      %27 = vector.load %arg11[%c0_18, %c0_19] : memref<8x128xf32, #tpu.memory_space<vmem>>, vector<8x128xf32>
      tpu.vector_store %arg11[%c0_18, %c0_19], %26 {strides = array<i32>} : memref<8x128xf32, #tpu.memory_space<vmem>>, vector<8x128xf32>,
    } else {
    }
    %c0_i32_2 = arith.constant 0 : i32
    %5 = arith.cmpi eq, %arg1, %c0_i32_2 : i32
    %6 = arith.extui %5 : i1 to i32
    %c0_i32_3 = arith.constant 0 : i32
    %7 = arith.cmpi ne, %6, %c0_i32_3 : i32
    scf.if %7 {
      %cst_17 = arith.constant 0.000000e+00 : f32
      %26 = vector.broadcast %cst_17 : f32 to vector<128x128xf32>
      %c0_18 = arith.constant 0 : index
      %c0_19 = arith.constant 0 : index
      %27 = vector.load %arg10[%c0_18, %c0_19] : memref<128x128xf32, #tpu.memory_space<vmem>>, vector<128x128xf32>
      tpu.vector_store %arg10[%c0_18, %c0_19], %26 {strides = array<i32>} : memref<128x128xf32, #tpu.memory_space<vmem>>, vector<128x128xf32>,
    } else {
    }
    %c0 = arith.constant 0 : index
    %c0_4 = arith.constant 0 : index
    %8 = vector.load %arg10[%c0, %c0_4] : memref<128x128xf32, #tpu.memory_space<vmem>>, vector<128x128xf32>
    %c0_5 = arith.constant 0 : index
    %c0_6 = arith.constant 0 : index
    %9 = vector.load %arg2[%c0_5, %c0_6] : memref<128x128xbf16, #tpu.memory_space<vmem>>, vector<128x128xbf16>
    %10 = arith.extf %9 : vector<128x128xbf16> to vector<128x128xf32>
    %c0_7 = arith.constant 0 : index
    %c0_8 = arith.constant 0 : index
    %11 = vector.load %arg3[%c0_7, %c0_8] : memref<128x128xf32, #tpu.memory_space<vmem>>, vector<128x128xf32>
    %cst = arith.constant dense<0.000000e+00> : vector<128x128xf32>
    %12 = tpu.matmul %10, %11, %cst {dimension_numbers = #tpu.dot_dimension_numbers<[1], [0], [0], [1], [0, 0, 1, 1], [], []>} : vector<128x128xf32>, vector<128x128xf32>, vector<128x128xf32> -> vector<128x128xf32>
    %13 = arith.addf %8, %12 : vector<128x128xf32>
    %c0_9 = arith.constant 0 : index
    %c0_10 = arith.constant 0 : index
    %14 = vector.load %arg10[%c0_9, %c0_10] : memref<128x128xf32, #tpu.memory_space<vmem>>, vector<128x128xf32>
    tpu.vector_store %arg10[%c0_9, %c0_10], %13 {strides = array<i32>} : memref<128x128xf32, #tpu.memory_space<vmem>>, vector<128x128xf32>,
    %15 = arith.cmpi eq, %arg1, %arg0 : i32
    %16 = arith.extui %15 : i1 to i32
    %c0_i32_11 = arith.constant 0 : i32
    %17 = arith.cmpi ne, %16, %c0_i32_11 : i32
    scf.if %17 {
      %c0_17 = arith.constant 0 : index
      %c0_18 = arith.constant 0 : index
      %26 = vector.load %arg10[%c0_17, %c0_18] : memref<128x128xf32, #tpu.memory_space<vmem>>, vector<128x128xf32>
      %c0_19 = arith.constant 0 : index
      %c0_20 = arith.constant 0 : index
      %27 = vector.load %arg3[%c0_19, %c0_20] : memref<128x128xf32, #tpu.memory_space<vmem>>, vector<128x128xf32>
      %28 = arith.addf %26, %27 : vector<128x128xf32>
      %c0_21 = arith.constant 0 : index
      %c0_22 = arith.constant 0 : index
      %29 = vector.load %arg10[%c0_21, %c0_22] : memref<128x128xf32, #tpu.memory_space<vmem>>, vector<128x128xf32>
      tpu.vector_store %arg10[%c0_21, %c0_22], %28 {strides = array<i32>} : memref<128x128xf32, #tpu.memory_space<vmem>>, vector<128x128xf32>,
    } else {
    }
    %c0_i32_12 = arith.constant 0 : i32
    %18 = arith.cmpi eq, %arg1, %c0_i32_12 : i32
    %19 = arith.extui %18 : i1 to i32
    %c0_i32_13 = arith.constant 0 : i32
    %20 = arith.cmpi ne, %19, %c0_i32_13 : i32
    scf.if %20 {
      %c0_17 = arith.constant 0 : index
      %c0_18 = arith.constant 0 : index
      %26 = vector.load %arg10[%c0_17, %c0_18] : memref<128x128xf32, #tpu.memory_space<vmem>>, vector<128x128xf32>
      %c0_19 = arith.constant 0 : index
      %c0_20 = arith.constant 0 : index
      %27 = vector.load %arg5[%c0_19, %c0_20] : memref<128x128xf32, #tpu.memory_space<vmem>>, vector<128x128xf32>
      %cst_21 = arith.constant dense<0.000000e+00> : vector<128x128xf32>
      %28 = tpu.matmul %26, %27, %cst_21 {dimension_numbers = #tpu.dot_dimension_numbers<[1], [0], [0], [1], [0, 0, 1, 1], [], []>} : vector<128x128xf32>, vector<128x128xf32>, vector<128x128xf32> -> vector<128x128xf32>
      %c0_22 = arith.constant 0 : index
      %c0_23 = arith.constant 0 : index
      %29 = vector.load %arg6[%c0_22, %c0_23] : memref<1x128xf32, #tpu.memory_space<vmem>>, vector<1x128xf32>
      %30 = vector.broadcast %29 : vector<1x128xf32> to vector<128x128xf32>
      %31 = arith.addf %28, %30 : vector<128x128xf32>
      %cst_24 = arith.constant 0.000000e+00 : f32
      %32 = vector.broadcast %cst_24 : f32 to vector<128x128xf32>
      %33 = arith.maximumf %31, %32 : vector<128x128xf32>
      %c0_25 = arith.constant 0 : index
      %c0_26 = arith.constant 0 : index
      %34 = vector.load %arg7[%c0_25, %c0_26] : memref<128x128xf32, #tpu.memory_space<vmem>>, vector<128x128xf32>
      %cst_27 = arith.constant dense<0.000000e+00> : vector<128x128xf32>
      %35 = tpu.matmul %33, %34, %cst_27 {dimension_numbers = #tpu.dot_dimension_numbers<[1], [0], [0], [1], [0, 0, 1, 1], [], []>} : vector<128x128xf32>, vector<128x128xf32>, vector<128x128xf32> -> vector<128x128xf32>
      %c0_28 = arith.constant 0 : index
      %c0_29 = arith.constant 0 : index
      %36 = vector.load %arg8[%c0_28, %c0_29] : memref<1x128xf32, #tpu.memory_space<vmem>>, vector<1x128xf32>
      %37 = vector.broadcast %36 : vector<1x128xf32> to vector<128x128xf32>
      %38 = arith.addf %35, %37 : vector<128x128xf32>
      %cst_30 = arith.constant 0.000000e+00 : f32
      %39 = vector.broadcast %cst_30 : f32 to vector<128x128xf32>
      %40 = arith.maximumf %38, %39 : vector<128x128xf32>
      %c0_31 = arith.constant 0 : index
      %c0_32 = arith.constant 0 : index
      %41 = vector.load %arg11[%c0_31, %c0_32] : memref<8x128xf32, #tpu.memory_space<vmem>>, vector<8x128xf32>
      %c0_33 = arith.constant 0 : index
      %c0_34 = arith.constant 0 : index
      %42 = vector.load %arg4[%c0_33, %c0_34] : memref<8x128xf32, #tpu.memory_space<vmem>>, vector<8x128xf32>
      %cst_35 = arith.constant dense<0.000000e+00> : vector<8x128xf32>
      %43 = tpu.matmul %42, %40, %cst_35 {dimension_numbers = #tpu.dot_dimension_numbers<[1], [0], [0], [1], [0, 0, 1, 1], [], []>} : vector<8x128xf32>, vector<128x128xf32>, vector<8x128xf32> -> vector<8x128xf32>
      %44 = arith.addf %41, %43 : vector<8x128xf32>
      %c0_36 = arith.constant 0 : index
      %c0_37 = arith.constant 0 : index
      %45 = vector.load %arg11[%c0_36, %c0_37] : memref<8x128xf32, #tpu.memory_space<vmem>>, vector<8x128xf32>
      tpu.vector_store %arg11[%c0_36, %c0_37], %44 {strides = array<i32>} : memref<8x128xf32, #tpu.memory_space<vmem>>, vector<8x128xf32>,
    } else {
    }
    %c0_i32_14 = arith.constant 0 : i32
    %21 = arith.cmpi eq, %arg0, %c0_i32_14 : i32
    %c0_i32_15 = arith.constant 0 : i32
    %22 = arith.cmpi eq, %arg1, %c0_i32_15 : i32
    %23 = arith.andi %21, %22 : i1
    %24 = arith.extui %23 : i1 to i32
    %c0_i32_16 = arith.constant 0 : i32
    %25 = arith.cmpi ne, %24, %c0_i32_16 : i32
    scf.if %25 {
      %c0_17 = arith.constant 0 : index
      %c0_18 = arith.constant 0 : index
      %26 = vector.load %arg11[%c0_17, %c0_18] : memref<8x128xf32, #tpu.memory_space<vmem>>, vector<8x128xf32>
      %c0_19 = arith.constant 0 : index
      %c0_20 = arith.constant 0 : index
      %27 = vector.load %arg9[%c0_19, %c0_20] : memref<8x128xf32, #tpu.memory_space<vmem>>, vector<8x128xf32>
      tpu.vector_store %arg9[%c0_19, %c0_20], %26 {strides = array<i32>} : memref<8x128xf32, #tpu.memory_space<vmem>>, vector<8x128xf32>,
    } else {
    }
    return
  }
  func.func @transform_0(%arg0: i32, %arg1: i32) -> (i32, i32) {
    %c0_i32 = arith.constant 0 : i32
    return %arg0, %arg1 : i32, i32
  }
  func.func @transform_1(%arg0: i32, %arg1: i32) -> (i32, i32) {
    %c0_i32 = arith.constant 0 : i32
    %c0_i32_0 = arith.constant 0 : i32
    return %arg1, %c0_i32 : i32, i32
  }
  func.func @transform_2(%arg0: i32, %arg1: i32) -> (i32, i32) {
    %c0_i32 = arith.constant 0 : i32
    %c0_i32_0 = arith.constant 0 : i32
    return %c0_i32, %arg0 : i32, i32
  }
  func.func @transform_3(%arg0: i32, %arg1: i32) -> (i32, i32) {
    %c0_i32 = arith.constant 0 : i32
    %c0_i32_0 = arith.constant 0 : i32
    %c0_i32_1 = arith.constant 0 : i32
    return %c0_i32, %c0_i32_0 : i32, i32
  }
  func.func @transform_4(%arg0: i32, %arg1: i32) -> (i32, i32) {
    %c0_i32 = arith.constant 0 : i32
    %c0_i32_0 = arith.constant 0 : i32
    %c0_i32_1 = arith.constant 0 : i32
    return %c0_i32, %c0_i32_0 : i32, i32
  }
  func.func @transform_5(%arg0: i32, %arg1: i32) -> (i32, i32) {
    %c0_i32 = arith.constant 0 : i32
    %c0_i32_0 = arith.constant 0 : i32
    %c0_i32_1 = arith.constant 0 : i32
    return %c0_i32, %c0_i32_0 : i32, i32
  }
  func.func @transform_6(%arg0: i32, %arg1: i32) -> (i32, i32) {
    %c0_i32 = arith.constant 0 : i32
    %c0_i32_0 = arith.constant 0 : i32
    %c0_i32_1 = arith.constant 0 : i32
    return %c0_i32, %c0_i32_0 : i32, i32
  }
  func.func @transform_7(%arg0: i32, %arg1: i32) -> (i32, i32) {
    %c0_i32 = arith.constant 0 : i32
    %c0_i32_0 = arith.constant 0 : i32
    %c0_i32_1 = arith.constant 0 : i32
    return %c0_i32, %c0_i32_0 : i32, i32
  }
}

</mosaic_0001>

<bundles_post_ra>
// kernel: gin_encoder.2
= control target key start
LH: loop header
LB: loop body
LE: loop exit
PB: predicated region body
PF: predicated region fallthrough
CT: control target
= control target key end

     0   :  { %s1501_s1 = inlined_call_operand.vmem [shape: f32[128,128], index: 1, kind: input, shape index: {}]   ;;  %s1502_s0 = inlined_call_operand.vmem [shape: bf16[128,128], index: 0, kind: input, shape index: {}]   ;;  %s1503_s2 = inlined_call_operand.vmem [shape: f32[128,128], index: 2, kind: input, shape index: {}]   ;;  %s1504_s4 = inlined_call_operand.vmem [shape: f32[128,128], index: 4, kind: input, shape index: {}]   ;;  %s1505_s3 = inlined_call_operand.vmem [shape: f32[1,128], index: 3, kind: input, shape index: {}]   ;;  %s1506_s5 = inlined_call_operand.vmem [shape: f32[1,128], index: 5, kind: input, shape index: {}]   ;;  %s1507_s6 = inlined_call_operand.vmem [shape: f32[128,128], index: 6, kind: output, shape index: {}]  }
   0x1   :  { %v1214_v0 = vld [vmem:[%s1501_s1] sm:$0xff]  ;;  %v1219_v1 = vld [vmem:[%s1501_s1 + $0x8] sm:$0xff]  ;;  %v1224_v2 = vld [vmem:[%s1501_s1 + $0x10] sm:$0xff] }
   0x2   :  { %v1064_v3 = vpack.c.bf16 %v1219_v1, %v1214_v0  ;;  %v1231_v4 = vld [vmem:[%s1501_s1 + $0x18] sm:$0xff]  ;;  %v1238_v6 = vld [vmem:[%s1501_s1 + $0x20] sm:$0xff]  ;;  %v1243_v7 = vld [vmem:[%s1501_s1 + $0x28] sm:$0xff] }
   0x3   :  { %v1068_v5 = vpack.c.bf16 %v1231_v4, %v1224_v2  ;;  %v1072_v8 = vpack.c.bf16 %v1243_v7, %v1238_v6  ;;  %v1250_v9 = vld [vmem:[%s1502_s0] sm:$0xff]   ;;  %v1255_v10 = vld [vmem:[%s1501_s1 + $0x30] sm:$0xff]  ;;  %v1260_v11 = vld [vmem:[%s1501_s1 + $0x38] sm:$0xff] }
   0x4   :  { %1065 = vmatprep.subr.bf16.mxu0 %v1064_v3  ;;  %v763_v12 = vunpack.c.l.bf16 %v1250_v9  ;;  %v371_v13 = vld [vmem:[%s1503_s2] sm:$0xff]  ;;  %v372_v14 = vld [vmem:[%s1503_s2 + $0x8] sm:$0xff]  ;;  %v373_v15 = vld [vmem:[%s1503_s2 + $0x10] sm:$0xff]  ;;  %v1076_v16 = vpack.c.bf16 %v1260_v11, %v1255_v10  ;;  %v764_v48 = vunpack.c.h.bf16 %v1250_v9 }
   0x5   :  { %1067 = vmatpush3.bf16.msra.mxu0 %v1064_v3  ;;  %v374_v17 = vld [vmem:[%s1503_s2 + $0x18] sm:$0xff]  ;;  %v1280_v18 = vld [vmem:[%s1501_s1 + $0x40] sm:$0xff]  ;;  %v1285_v19 = vld [vmem:[%s1501_s1 + $0x48] sm:$0xff]  ;;  %v1096_v20 = vpack.c.bf16 %v372_v14, %v371_v13 }
   0x6   :  { %1069 = vmatprep.subr.bf16.mxu0 %v1068_v5  ;;  %928 = vmatprep.mubr.f32.mxu0 %v763_v12  ;;  %v1100_v21 = vpack.c.bf16 %v374_v17, %v373_v15  ;;  %v375_v22 = vld [vmem:[%s1503_s2 + $0x20] sm:$0xff]  ;;  %v376_v23 = vld [vmem:[%s1503_s2 + $0x28] sm:$0xff]  ;;  %v1080_v24 = vpack.c.bf16 %v1285_v19, %v1280_v18  ;;  %v1298_v25 = vld [vmem:[%s1501_s1 + $0x50] sm:$0xff] }
   0x7   :  { %1097 = vmatprep.subr.bf16.mxu1 %v1096_v20  ;;  %v1303_v26 = vld [vmem:[%s1501_s1 + $0x58] sm:$0xff]  ;;  %v1104_v27 = vpack.c.bf16 %v376_v23, %v375_v22  ;;  %v377_v28 = vld [vmem:[%s1503_s2 + $0x30] sm:$0xff]  ;;  %v1316_v31 = vld [vmem:[%s1501_s1 + $0x60] sm:$0xff] }
   0x8   :  { %1099 = vmatpush3.bf16.msra.mxu1 %v1096_v20  ;;  %v378_v29 = vld [vmem:[%s1503_s2 + $0x38] sm:$0xff]  ;;  %v1084_v30 = vpack.c.bf16 %v1303_v26, %v1298_v25  ;;  %v1321_v32 = vld [vmem:[%s1501_s1 + $0x68] sm:$0xff]  ;;  %v379_v34 = vld [vmem:[%s1503_s2 + $0x40] sm:$0xff] }
   0x9   :  { %1071 = vmatpush3.bf16.msra.mxu0 %v1068_v5  ;;  %1101 = vmatprep.subr.bf16.mxu1 %v1100_v21  ;;  %v1108_v33 = vpack.c.bf16 %v378_v29, %v377_v28  ;;  %v380_v35 = vld [vmem:[%s1503_s2 + $0x48] sm:$0xff]  ;;  %v1088_v36 = vpack.c.bf16 %v1321_v32, %v1316_v31  ;;  %v1334_v37 = vld [vmem:[%s1501_s1 + $0x70] sm:$0xff]  ;;  %v1339_v38 = vld [vmem:[%s1501_s1 + $0x78] sm:$0xff] }
   0xa   :  { %1073 = vmatprep.subr.bf16.mxu0 %v1072_v8  ;;  %v1112_v39 = vpack.c.bf16 %v380_v35, %v379_v34  ;;  %v381_v40 = vld [vmem:[%s1503_s2 + $0x50] sm:$0xff]  ;;  %v382_v41 = vld [vmem:[%s1503_s2 + $0x58] sm:$0xff]  ;;  %v1092_v42 = vpack.c.bf16 %v1339_v38, %v1334_v37  ;;  %v383_v44 = vld [vmem:[%s1503_s2 + $0x60] sm:$0xff] }
   0xb   :  { %v1116_v43 = vpack.c.bf16 %v382_v41, %v381_v40  ;;  %v384_v45 = vld [vmem:[%s1503_s2 + $0x68] sm:$0xff]  ;;  %v794_v50 = vld [vmem:[%s1502_s0 + $0x10] sm:$0xff]   ;;  %v795_v53 = vld [vmem:[%s1502_s0 + $0x18] sm:$0xff]  }
   0xc   :  { %1103 = vmatpush3.bf16.msra.mxu1 %v1100_v21  ;;  %v793_v46 = vld [vmem:[%s1502_s0 + $0x8] sm:$0xff]   ;;  %v1120_v47 = vpack.c.bf16 %v384_v45, %v383_v44  ;;  %v771_v52 = vunpack.c.l.bf16 %v794_v50  ;;  %v772_v54 = vunpack.c.h.bf16 %v794_v50  ;;  %v775_v55 = vunpack.c.l.bf16 %v795_v53  ;;  %v796_v56 = vld [vmem:[%s1502_s0 + $0x20] sm:$0xff]   ;;  %v798_v62 = vld [vmem:[%s1502_s0 + $0x30] sm:$0xff]  }
   0xd   :  { %1075 = vmatpush3.bf16.msra.mxu0 %v1072_v8  ;;  %1105 = vmatprep.subr.bf16.mxu1 %v1104_v27  ;;  %v767_v49 = vunpack.c.l.bf16 %v793_v46  ;;  %v768_v51 = vunpack.c.h.bf16 %v793_v46  ;;  %v776_v57 = vunpack.c.h.bf16 %v795_v53  ;;  %v779_v58 = vunpack.c.l.bf16 %v796_v56  ;;  %v797_v59 = vld [vmem:[%s1502_s0 + $0x28] sm:$0xff]   ;;  %v799_v5 = vld [vmem:[%s1502_s0 + $0x38] sm:$0xff]   ;;  %v385_v13 = vld [vmem:[%s1503_s2 + $0x70] sm:$0xff] }
   0xe   :  { %1077 = vmatprep.subr.bf16.mxu0 %v1076_v16  ;;  %v780_v60 = vunpack.c.h.bf16 %v796_v56  ;;  %v783_v61 = vunpack.c.l.bf16 %v797_v59  ;;  %v784_v63 = vunpack.c.h.bf16 %v797_v59  ;;  %v787_v3 = vunpack.c.l.bf16 %v798_v62  ;;  %v386_v14 = vld [vmem:[%s1503_s2 + $0x78] sm:$0xff]  ;;  %v556_v17 = vld [vmem:[%s1504_s4 + $0x8] sm:$0xff]  ;;  %v557_v20 = vld [vmem:[%s1504_s4 + $0x10] sm:$0xff] }
   0xf   :  { %v788_v8 = vunpack.c.h.bf16 %v798_v62  ;;  %v791_v9 = vunpack.c.l.bf16 %v799_v5  ;;  %v792_v12 = vunpack.c.h.bf16 %v799_v5  ;;  %v1124_v15 = vpack.c.bf16 %v386_v14, %v385_v13  ;;  %v558_v22 = vld [vmem:[%s1504_s4 + $0x18] sm:$0xff]  ;;  %v561_v29 = vld [vmem:[%s1504_s4 + $0x30] sm:$0xff]  ;;  %v563_v34 = vld [vmem:[%s1504_s4 + $0x40] sm:$0xff] }
  0x10   :  { %1107 = vmatpush3.bf16.msra.mxu1 %v1104_v27  ;;  %v1132_v23 = vpack.c.bf16 %v558_v22, %v557_v20  ;;  %v560_v27 = vld [vmem:[%s1504_s4 + $0x28] sm:$0xff]  ;;  %v566_v40 = vld [vmem:[%s1504_s4 + $0x58] sm:$0xff]  ;;  %v569_v5 = vld [vmem:[%s1504_s4 + $0x70] sm:$0xff] }
  0x11   :  { %1079 = vmatpush3.bf16.msra.mxu0 %v1076_v16  ;;  %1109 = vmatprep.subr.bf16.mxu1 %v1108_v33  ;;  %v555_v16 = vld [vmem:[%s1504_s4] sm:$0xff]  ;;  %v564_v35 = vld [vmem:[%s1504_s4 + $0x48] sm:$0xff] }
  0x12   :  { %1081 = vmatprep.subr.bf16.mxu0 %v1080_v24  ;;  %v1128_v21 = vpack.c.bf16 %v556_v17, %v555_v16 }
  0x14   :  { %1111 = vmatpush3.bf16.msra.mxu1 %v1108_v33 }
  0x15   :  { %1083 = vmatpush3.bf16.msra.mxu0 %v1080_v24  ;;  %1113 = vmatprep.subr.bf16.mxu1 %v1112_v39  ;;  %v559_v24 = vld [vmem:[%s1504_s4 + $0x20] sm:$0xff] }
  0x16   :  { %1085 = vmatprep.subr.bf16.mxu0 %v1084_v30  ;;  %v1136_v28 = vpack.c.bf16 %v560_v27, %v559_v24 }
  0x18   :  { %1115 = vmatpush3.bf16.msra.mxu1 %v1112_v39  ;;  %v565_v39 = vld [vmem:[%s1504_s4 + $0x50] sm:$0xff] }
  0x19   :  { %1087 = vmatpush3.bf16.msra.mxu0 %v1084_v30  ;;  %1117 = vmatprep.subr.bf16.mxu1 %v1116_v43  ;;  %v562_v30 = vld [vmem:[%s1504_s4 + $0x38] sm:$0xff]  ;;  %v1148_v41 = vpack.c.bf16 %v566_v40, %v565_v39 }
  0x1a   :  { %1089 = vmatprep.subr.bf16.mxu0 %v1088_v36  ;;  %v1140_v33 = vpack.c.bf16 %v562_v30, %v561_v29 }
  0x1c   :  { %1119 = vmatpush3.bf16.msra.mxu1 %v1116_v43  ;;  %v568_v43 = vld [vmem:[%s1504_s4 + $0x68] sm:$0xff] }
  0x1d   :  { %1091 = vmatpush3.bf16.msra.mxu0 %v1088_v36  ;;  %1121 = vmatprep.subr.bf16.mxu1 %v1120_v47  ;;  %v1144_v36 = vpack.c.bf16 %v564_v35, %v563_v34 }
  0x1e   :  { %1093 = vmatprep.subr.bf16.mxu0 %v1092_v42 }
  0x20   :  { %1123 = vmatpush3.bf16.msra.mxu1 %v1120_v47 }
  0x21   :  { %1095 = vmatpush3.bf16.msra.mxu0 %v1092_v42  ;;  %1125 = vmatprep.subr.bf16.mxu1 %v1124_v15  ;;  %v567_v42 = vld [vmem:[%s1504_s4 + $0x60] sm:$0xff] }
  0x22   :  { %1129 = vmatprep.subr.bf16.mxu0 %v1128_v21  ;;  %v1152_v44 = vpack.c.bf16 %v568_v43, %v567_v42 }
  0x24   :  { %929 = vmatmul.mubr.f32.vlgmr.msra.gmra.mrb[0].mxu0 %v764_v48  ;;  %1127 = vmatpush3.bf16.msra.mxu1 %v1124_v15 }
  0x25   :  { %931 = vmatprep.mubr.f32.mxu0 %v767_v49  ;;  %1160 = vmatprep.subr.bf16.mxu1 %v1128_v21 }
  0x26   :  { %1131 = vmatpush3.bf16.msra.mxu0 %v1128_v21 }
  0x27   :  { %1133 = vmatprep.subr.bf16.mxu0 %v1132_v23 }
  0x28   :  { %932 = vmatmul.mubr.f32.gmra.mrb[2].mxu0 %v768_v51 }
  0x29   :  { %934 = vmatprep.mubr.f32.mxu0 %v771_v52 }
  0x2a   :  { %1135 = vmatpush3.bf16.msra.mxu0 %v1132_v23 }
  0x2b   :  { %1137 = vmatprep.subr.bf16.mxu0 %v1136_v28 }
  0x2c   :  { %935 = vmatmul.mubr.f32.gmra.mrb[4].mxu0 %v772_v54 }
  0x2d   :  { %937 = vmatprep.mubr.f32.mxu0 %v775_v55 }
  0x2e   :  { %1139 = vmatpush3.bf16.msra.mxu0 %v1136_v28 }
  0x2f   :  { %1141 = vmatprep.subr.bf16.mxu0 %v1140_v33 }
  0x30   :  { %938 = vmatmul.mubr.f32.gmra.mrb[6].mxu0 %v776_v57 }
  0x31   :  { %940 = vmatprep.mubr.f32.mxu0 %v779_v58 }
  0x32   :  { %1143 = vmatpush3.bf16.msra.mxu0 %v1140_v33 }
  0x33   :  { %1145 = vmatprep.subr.bf16.mxu0 %v1144_v36 }
  0x34   :  { %941 = vmatmul.mubr.f32.gmra.mrb[8].mxu0 %v780_v60 }
  0x35   :  { %943 = vmatprep.mubr.f32.mxu0 %v783_v61 }
  0x36   :  { %1147 = vmatpush3.bf16.msra.mxu0 %v1144_v36 }
  0x37   :  { %1149 = vmatprep.subr.bf16.mxu0 %v1148_v41 }
  0x38   :  { %944 = vmatmul.mubr.f32.gmra.mrb[10].mxu0 %v784_v63 }
  0x39   :  { %946 = vmatprep.mubr.f32.mxu0 %v787_v3 }
  0x3a   :  { %1151 = vmatpush3.bf16.msra.mxu0 %v1148_v41 }
  0x3b   :  { %1153 = vmatprep.subr.bf16.mxu0 %v1152_v44 }
  0x3c   :  { %947 = vmatmul.mubr.f32.gmra.mrb[12].mxu0 %v788_v8 }
  0x3d   :  { %949 = vmatprep.mubr.f32.mxu0 %v791_v9 }
  0x3e   :  { %1155 = vmatpush3.bf16.msra.mxu0 %v1152_v44 }
  0x40   :  { %950 = vmatmul.mubr.f32.gmra.mrb[14].mxu0 %v792_v12 }
  0xf7   :  { %v930_v45 = vpop.f32.mrb[0].mxu0 }
  0xf8   :  { %v173_v46 = vpop.f32.mrb[1].mxu0  ;;  %v321_v48 = vadd.f32 %v930_v45, %v1219_v1 }
  0xf9   :  { %v320_v47 = vadd.f32 %v173_v46, %v1214_v0 }
  0xfb   :  { %v933_v49 = vpop.f32.mrb[2].mxu0  ;;  %984 = vmatprep.mubr.f32.mxu1 %v320_v47 }
  0xfc   :  { %v183_v50 = vpop.f32.mrb[3].mxu0  ;;  %985 = vmatmul.mubr.f32.vlgmr.msra.gmra.mrb[0].mxu1 %v321_v48  ;;  %v323_v52 = vadd.f32 %v933_v49, %v1231_v4 }
  0xfd   :  { %v322_v51 = vadd.f32 %v183_v50, %v1224_v2  ;;  %1168 = vmatpush3.bf16.msra.mxu1 %v1128_v21 }
  0xfe   :  { %1161 = vmatprep.subr.bf16.mxu1 %v1132_v23 }
  0xff   :  { %v936_v53 = vpop.f32.mrb[4].mxu0  ;;  %987 = vmatprep.mubr.f32.mxu1 %v322_v51 }
 0x100   :  { %v193_v54 = vpop.f32.mrb[5].mxu0  ;;  %988 = vmatmul.mubr.f32.gmra.mrb[2].mxu1 %v323_v52  ;;  %v325_v0 = vadd.f32 %v936_v53, %v1243_v7 }
 0x101   :  { %v324_v55 = vadd.f32 %v193_v54, %v1238_v6  ;;  %1169 = vmatpush3.bf16.msra.mxu1 %v1132_v23 }
 0x102   :  { %1162 = vmatprep.subr.bf16.mxu1 %v1136_v28 }
 0x103   :  { %v939_v1 = vpop.f32.mrb[6].mxu0  ;;  %990 = vmatprep.mubr.f32.mxu1 %v324_v55 }
 0x104   :  { %v203_v56 = vpop.f32.mrb[7].mxu0  ;;  %991 = vmatmul.mubr.f32.gmra.mrb[4].mxu1 %v325_v0  ;;  %v327_v4 = vadd.f32 %v939_v1, %v1260_v11 }
 0x105   :  { %v326_v2 = vadd.f32 %v203_v56, %v1255_v10  ;;  %1170 = vmatpush3.bf16.msra.mxu1 %v1136_v28 }
 0x106   :  { %1163 = vmatprep.subr.bf16.mxu1 %v1140_v33 }
 0x107   :  { %v942_v57 = vpop.f32.mrb[8].mxu0  ;;  %993 = vmatprep.mubr.f32.mxu1 %v326_v2 }
 0x108   :  { %v213_v58 = vpop.f32.mrb[9].mxu0  ;;  %994 = vmatmul.mubr.f32.gmra.mrb[6].mxu1 %v327_v4  ;;  %v329_v7 = vadd.f32 %v942_v57, %v1285_v19 }
 0x109   :  { %v328_v6 = vadd.f32 %v213_v58, %v1280_v18  ;;  %1171 = vmatpush3.bf16.msra.mxu1 %v1140_v33 }
 0x10a   :  { %1164 = vmatprep.subr.bf16.mxu1 %v1144_v36 }
 0x10b   :  { %v945_v59 = vpop.f32.mrb[10].mxu0  ;;  %996 = vmatprep.mubr.f32.mxu1 %v328_v6 }
 0x10c   :  { %v223_v60 = vpop.f32.mrb[11].mxu0  ;;  %997 = vmatmul.mubr.f32.gmra.mrb[8].mxu1 %v329_v7  ;;  %v331_v11 = vadd.f32 %v945_v59, %v1303_v26  ;;  %v760_v59 = vld [vmem:[%s1506_s5] ss:$0 sm:$0xff] }
 0x10d   :  { %v330_v10 = vadd.f32 %v223_v60, %v1298_v25  ;;  %1172 = vmatpush3.bf16.msra.mxu1 %v1144_v36 }
 0x10e   :  { %1165 = vmatprep.subr.bf16.mxu1 %v1148_v41 }
 0x10f   :  { %v948_v61 = vpop.f32.mrb[12].mxu0  ;;  %999 = vmatprep.mubr.f32.mxu1 %v330_v10 }
 0x110   :  { %v233_v62 = vpop.f32.mrb[13].mxu0  ;;  %1000 = vmatmul.mubr.f32.gmra.mrb[10].mxu1 %v331_v11  ;;  %v333_v19 = vadd.f32 %v948_v61, %v1321_v32 }
 0x111   :  { %v332_v18 = vadd.f32 %v233_v62, %v1316_v31  ;;  %1173 = vmatpush3.bf16.msra.mxu1 %v1148_v41  ;;  %v570_v31 = vld [vmem:[%s1504_s4 + $0x78] sm:$0xff] }
 0x112   :  { %1166 = vmatprep.subr.bf16.mxu1 %v1152_v44  ;;  %v1156_v32 = vpack.c.bf16 %v570_v31, %v569_v5 }
 0x113   :  { %v951_v63 = vpop.f32.mrb[14].mxu0  ;;  %1002 = vmatprep.mubr.f32.mxu1 %v332_v18 }
 0x114   :  { %v243_v3 = vpop.f32.mrb[15].mxu0  ;;  %1003 = vmatmul.mubr.f32.gmra.mrb[12].mxu1 %v333_v19  ;;  %v335_v26 = vadd.f32 %v951_v63, %v1339_v38  ;;  %1157 = vmatprep.subr.bf16.mxu0 %v1156_v32 }
 0x115   :  { %v334_v25 = vadd.f32 %v243_v3, %v1334_v37  ;;  %1174 = vmatpush3.bf16.msra.mxu1 %v1152_v44  ;;  %1159 = vmatpush3.bf16.msra.mxu0 %v1156_v32  ;;  %v759_v37 = vld [vmem:[%s1505_s3] ss:$0 sm:$0xff] }
 0x116   :  { %1167 = vmatprep.subr.bf16.mxu1 %v1156_v32 }
 0x117   :  { %1005 = vmatprep.mubr.f32.mxu1 %v334_v25 }
 0x118   :  { %1006 = vmatmul.mubr.f32.gmra.mrb[14].mxu1 %v335_v26 }
 0x119   :  { %1175 = vmatpush3.bf16.msra.mxu1 %v1156_v32 }
 0x1cf   :  { %v986_v38 = vpop.f32.mrb[0].mxu1 }
 0x1d0   :  { %v466_v8 = vadd.f32 %v986_v38, %v759_v37  ;;  %v460_v9 = vpop.f32.mrb[1].mxu1 }
 0x1d1   :  { %v461_v12 = vadd.f32 %v759_v37, %v460_v9 }
 0x1d2   :  { %v540_v15 = vmax.f32 %v466_v8, 0.0 }
 0x1d3   :  { %v539_v13 = vmax.f32 %v461_v12, 0.0  ;;  %v989_v14 = vpop.f32.mrb[2].mxu1 }
 0x1d4   :  { %v476_v16 = vadd.f32 %v989_v14, %v759_v37  ;;  %v470_v17 = vpop.f32.mrb[3].mxu1 }
 0x1d5   :  { %v471_v20 = vadd.f32 %v759_v37, %v470_v17  ;;  %1040 = vmatprep.mubr.f32.mxu0 %v539_v13 }
 0x1d6   :  { %1041 = vmatmul.mubr.f32.vlgmr.msra.gmra.mrb[16].mxu0 %v540_v15  ;;  %v542_v23 = vmax.f32 %v476_v16, 0.0 }
 0x1d7   :  { %v541_v21 = vmax.f32 %v471_v20, 0.0  ;;  %v992_v22 = vpop.f32.mrb[4].mxu1 }
 0x1d8   :  { %v486_v24 = vadd.f32 %v992_v22, %v759_v37  ;;  %v480_v27 = vpop.f32.mrb[5].mxu1 }
 0x1d9   :  { %v481_v28 = vadd.f32 %v759_v37, %v480_v27  ;;  %1043 = vmatprep.mubr.f32.mxu0 %v541_v21 }
 0x1da   :  { %1044 = vmatmul.mubr.f32.gmra.mrb[18].mxu0 %v542_v23  ;;  %v544_v33 = vmax.f32 %v486_v24, 0.0 }
 0x1db   :  { %v543_v29 = vmax.f32 %v481_v28, 0.0  ;;  %v995_v30 = vpop.f32.mrb[6].mxu1 }
 0x1dc   :  { %v496_v34 = vadd.f32 %v995_v30, %v759_v37  ;;  %v490_v35 = vpop.f32.mrb[7].mxu1 }
 0x1dd   :  { %v491_v36 = vadd.f32 %v759_v37, %v490_v35  ;;  %1046 = vmatprep.mubr.f32.mxu0 %v543_v29 }
 0x1de   :  { %1047 = vmatmul.mubr.f32.gmra.mrb[20].mxu0 %v544_v33  ;;  %v546_v41 = vmax.f32 %v496_v34, 0.0 }
 0x1df   :  { %v545_v39 = vmax.f32 %v491_v36, 0.0  ;;  %v998_v40 = vpop.f32.mrb[8].mxu1 }
 0x1e0   :  { %v506_v42 = vadd.f32 %v998_v40, %v759_v37  ;;  %v500_v43 = vpop.f32.mrb[9].mxu1 }
 0x1e1   :  { %v501_v44 = vadd.f32 %v759_v37, %v500_v43  ;;  %1049 = vmatprep.mubr.f32.mxu0 %v545_v39 }
 0x1e2   :  { %1050 = vmatmul.mubr.f32.gmra.mrb[22].mxu0 %v546_v41  ;;  %v548_v47 = vmax.f32 %v506_v42, 0.0 }
 0x1e3   :  { %v547_v45 = vmax.f32 %v501_v44, 0.0  ;;  %v1001_v46 = vpop.f32.mrb[10].mxu1 }
 0x1e4   :  { %v516_v48 = vadd.f32 %v1001_v46, %v759_v37  ;;  %v510_v49 = vpop.f32.mrb[11].mxu1 }
 0x1e5   :  { %v511_v50 = vadd.f32 %v759_v37, %v510_v49  ;;  %1052 = vmatprep.mubr.f32.mxu1 %v547_v45 }
 0x1e6   :  { %1053 = vmatmul.mubr.f32.vlgmr.msra.gmra.mrb[16].mxu1 %v548_v47  ;;  %v550_v53 = vmax.f32 %v516_v48, 0.0 }
 0x1e7   :  { %v549_v51 = vmax.f32 %v511_v50, 0.0  ;;  %v1004_v52 = vpop.f32.mrb[12].mxu1 }
 0x1e8   :  { %v526_v54 = vadd.f32 %v1004_v52, %v759_v37  ;;  %v520_v55 = vpop.f32.mrb[13].mxu1 }
 0x1e9   :  { %v521_v0 = vadd.f32 %v759_v37, %v520_v55  ;;  %1055 = vmatprep.mubr.f32.mxu1 %v549_v51 }
 0x1ea   :  { %1056 = vmatmul.mubr.f32.gmra.mrb[18].mxu1 %v550_v53  ;;  %v552_v2 = vmax.f32 %v526_v54, 0.0 }
 0x1eb   :  { %v551_v1 = vmax.f32 %v521_v0, 0.0  ;;  %v1007_v56 = vpop.f32.mrb[14].mxu1 }
 0x1ec   :  { %v536_v4 = vadd.f32 %v1007_v56, %v759_v37  ;;  %v530_v57 = vpop.f32.mrb[15].mxu1 }
 0x1ed   :  { %v531_v58 = vadd.f32 %v759_v37, %v530_v57  ;;  %1058 = vmatprep.mubr.f32.mxu1 %v551_v1 }
 0x1ee   :  { %1059 = vmatmul.mubr.f32.gmra.mrb[20].mxu1 %v552_v2  ;;  %v554_v7 = vmax.f32 %v536_v4, 0.0 }
 0x1ef   :  { %v553_v6 = vmax.f32 %v531_v58, 0.0 }
 0x1f1   :  { %1061 = vmatprep.mubr.f32.mxu1 %v553_v6 }
 0x1f2   :  { %1062 = vmatmul.mubr.f32.gmra.mrb[22].mxu1 %v554_v7 }
 0x2a9   :  { %v1042_v60 = vpop.f32.mrb[16].mxu0 }
 0x2aa   :  { %v650_v10 = vadd.f32 %v1042_v60, %v760_v59  ;;  %v644_v11 = vpop.f32.mrb[17].mxu0 }
 0x2ab   :  { %v645_v61 = vadd.f32 %v760_v59, %v644_v11 }
 0x2ac   :  { %v724_v62 = vmax.f32 %v650_v10, 0.0 }
 0x2ad   :  { %v723_v18 = vmax.f32 %v645_v61, 0.0  ;;  %v1045_v19 = vpop.f32.mrb[18].mxu0 }
 0x2ae   :  { %740 = vst [vmem:[%s1507_s6 + $0x8] sm:$0xff] %v724_v62  ;;  %v660_v63 = vadd.f32 %v1045_v19, %v760_v59  ;;  %v654_v3 = vpop.f32.mrb[19].mxu0 }
 0x2af   :  { %739 = vst [vmem:[%s1507_s6] sm:$0xff] %v723_v18  ;;  %v655_v25 = vadd.f32 %v760_v59, %v654_v3 }
 0x2b0   :  { %v726_v26 = vmax.f32 %v660_v63, 0.0 }
 0x2b1   :  { %v725_v5 = vmax.f32 %v655_v25, 0.0  ;;  %v1048_v31 = vpop.f32.mrb[20].mxu0 }
 0x2b2   :  { %742 = vst [vmem:[%s1507_s6 + $0x18] sm:$0xff] %v726_v26  ;;  %v670_v32 = vadd.f32 %v1048_v31, %v760_v59  ;;  %v664_v37 = vpop.f32.mrb[21].mxu0 }
 0x2b3   :  { %741 = vst [vmem:[%s1507_s6 + $0x10] sm:$0xff] %v725_v5  ;;  %v665_v38 = vadd.f32 %v760_v59, %v664_v37 }
 0x2b4   :  { %v728_v8 = vmax.f32 %v670_v32, 0.0 }
 0x2b5   :  { %v727_v9 = vmax.f32 %v665_v38, 0.0  ;;  %v1051_v12 = vpop.f32.mrb[22].mxu0 }
 0x2b6   :  { %744 = vst [vmem:[%s1507_s6 + $0x28] sm:$0xff] %v728_v8  ;;  %v680_v13 = vadd.f32 %v1051_v12, %v760_v59  ;;  %v674_v14 = vpop.f32.mrb[23].mxu0 }
 0x2b7   :  { %743 = vst [vmem:[%s1507_s6 + $0x20] sm:$0xff] %v727_v9  ;;  %v675_v15 = vadd.f32 %v760_v59, %v674_v14 }
 0x2b8   :  { %v730_v16 = vmax.f32 %v680_v13, 0.0 }
 0x2b9   :  { %v729_v17 = vmax.f32 %v675_v15, 0.0  ;;  %v1054_v20 = vpop.f32.mrb[16].mxu1 }
 0x2ba   :  { %746 = vst [vmem:[%s1507_s6 + $0x38] sm:$0xff] %v730_v16  ;;  %v690_v21 = vadd.f32 %v1054_v20, %v760_v59  ;;  %v684_v22 = vpop.f32.mrb[17].mxu1 }
 0x2bb   :  { %745 = vst [vmem:[%s1507_s6 + $0x30] sm:$0xff] %v729_v17  ;;  %v685_v23 = vadd.f32 %v760_v59, %v684_v22 }
 0x2bc   :  { %v732_v24 = vmax.f32 %v690_v21, 0.0 }
 0x2bd   :  { %v731_v27 = vmax.f32 %v685_v23, 0.0  ;;  %v1057_v28 = vpop.f32.mrb[18].mxu1 }
 0x2be   :  { %748 = vst [vmem:[%s1507_s6 + $0x48] sm:$0xff] %v732_v24  ;;  %v700_v29 = vadd.f32 %v1057_v28, %v760_v59  ;;  %v694_v30 = vpop.f32.mrb[19].mxu1 }
 0x2bf   :  { %747 = vst [vmem:[%s1507_s6 + $0x40] sm:$0xff] %v731_v27  ;;  %v695_v33 = vadd.f32 %v760_v59, %v694_v30 }
 0x2c0   :  { %v734_v34 = vmax.f32 %v700_v29, 0.0 }
 0x2c1   :  { %v733_v35 = vmax.f32 %v695_v33, 0.0  ;;  %v1060_v36 = vpop.f32.mrb[20].mxu1 }
 0x2c2   :  { %750 = vst [vmem:[%s1507_s6 + $0x58] sm:$0xff] %v734_v34  ;;  %v710_v39 = vadd.f32 %v1060_v36, %v760_v59  ;;  %v704_v40 = vpop.f32.mrb[21].mxu1 }
 0x2c3   :  { %749 = vst [vmem:[%s1507_s6 + $0x50] sm:$0xff] %v733_v35  ;;  %v705_v41 = vadd.f32 %v760_v59, %v704_v40 }
 0x2c4   :  { %v736_v42 = vmax.f32 %v710_v39, 0.0 }
 0x2c5   :  { %v735_v43 = vmax.f32 %v705_v41, 0.0  ;;  %v1063_v44 = vpop.f32.mrb[22].mxu1 }
 0x2c6   :  { %752 = vst [vmem:[%s1507_s6 + $0x68] sm:$0xff] %v736_v42  ;;  %v720_v45 = vadd.f32 %v1063_v44, %v760_v59  ;;  %v714_v46 = vpop.f32.mrb[23].mxu1 }
 0x2c7   :  { %751 = vst [vmem:[%s1507_s6 + $0x60] sm:$0xff] %v735_v43  ;;  %v715_v47 = vadd.f32 %v760_v59, %v714_v46 }
 0x2c8   :  { %v738_v48 = vmax.f32 %v720_v45, 0.0 }
 0x2c9   :  { %v737_v49 = vmax.f32 %v715_v47, 0.0 }
 0x2ca   :  { %754 = vst [vmem:[%s1507_s6 + $0x78] sm:$0xff] %v738_v48 }
 0x2cb   :  { %753 = vst [vmem:[%s1507_s6 + $0x70] sm:$0xff] %v737_v49 }

// kernel: gin_encoder.3
= control target key start
LH: loop header
LB: loop body
LE: loop exit
PB: predicated region body
PF: predicated region fallthrough
CT: control target
= control target key end

     0   :  { %vm1311_vm0 = vmmov 0   ;;  %s1627_s1 = inlined_call_operand.vmem [shape: f32[128,128], index: 1, kind: input, shape index: {}]   ;;  %s1628_s0 = inlined_call_operand.vmem [shape: bf16[128,128], index: 0, kind: input, shape index: {}]   ;;  %s1629_s3 = inlined_call_operand.vmem [shape: f32[128,128], index: 3, kind: input, shape index: {}]   ;;  %s1630_s5 = inlined_call_operand.vmem [shape: f32[128,128], index: 5, kind: input, shape index: {}]   ;;  %s1631_s4 = inlined_call_operand.vmem [shape: f32[1,128], index: 4, kind: input, shape index: {}]   ;;  %s1632_s6 = inlined_call_operand.vmem [shape: f32[1,128], index: 6, kind: input, shape index: {}]   ;;  %s1633_s2 = inlined_call_operand.vmem [shape: f32[8,128], index: 2, kind: input, shape index: {}]   ;;  %s1634_s7 = inlined_call_operand.vmem [shape: f32[8,128], index: 7, kind: output, shape index: {}]  }
   0x1   :  { %v1356_v0 = vld [vmem:[%s1627_s1] sm:$0xff]  ;;  %v1361_v1 = vld [vmem:[%s1627_s1 + $0x8] sm:$0xff]  ;;  %v1366_v2 = vld [vmem:[%s1627_s1 + $0x10] sm:$0xff] }
   0x2   :  { %v1187_v3 = vpack.c.bf16 %v1361_v1, %v1356_v0  ;;  %v1373_v4 = vld [vmem:[%s1627_s1 + $0x18] sm:$0xff]  ;;  %v1380_v6 = vld [vmem:[%s1627_s1 + $0x20] sm:$0xff]  ;;  %v1385_v7 = vld [vmem:[%s1627_s1 + $0x28] sm:$0xff] }
   0x3   :  { %v1191_v5 = vpack.c.bf16 %v1373_v4, %v1366_v2  ;;  %v1195_v8 = vpack.c.bf16 %v1385_v7, %v1380_v6  ;;  %v1392_v9 = vld [vmem:[%s1628_s0] sm:$0xff]   ;;  %v1397_v10 = vld [vmem:[%s1627_s1 + $0x30] sm:$0xff]  ;;  %v1402_v11 = vld [vmem:[%s1627_s1 + $0x38] sm:$0xff] }
   0x4   :  { %1188 = vmatprep.subr.bf16.mxu0 %v1187_v3  ;;  %v834_v12 = vunpack.c.l.bf16 %v1392_v9  ;;  %v380_v13 = vld [vmem:[%s1629_s3] sm:$0xff]  ;;  %v381_v14 = vld [vmem:[%s1629_s3 + $0x8] sm:$0xff]  ;;  %v382_v15 = vld [vmem:[%s1629_s3 + $0x10] sm:$0xff]  ;;  %v1199_v16 = vpack.c.bf16 %v1402_v11, %v1397_v10  ;;  %v835_v48 = vunpack.c.h.bf16 %v1392_v9 }
   0x5   :  { %1190 = vmatpush3.bf16.msra.mxu0 %v1187_v3  ;;  %v383_v17 = vld [vmem:[%s1629_s3 + $0x18] sm:$0xff]  ;;  %v1422_v18 = vld [vmem:[%s1627_s1 + $0x40] sm:$0xff]  ;;  %v1427_v19 = vld [vmem:[%s1627_s1 + $0x48] sm:$0xff]  ;;  %v1219_v20 = vpack.c.bf16 %v381_v14, %v380_v13 }
   0x6   :  { %1192 = vmatprep.subr.bf16.mxu0 %v1191_v5  ;;  %1016 = vmatprep.mubr.f32.mxu0 %v834_v12  ;;  %v1223_v21 = vpack.c.bf16 %v383_v17, %v382_v15  ;;  %v384_v22 = vld [vmem:[%s1629_s3 + $0x20] sm:$0xff]  ;;  %v385_v23 = vld [vmem:[%s1629_s3 + $0x28] sm:$0xff]  ;;  %v1203_v24 = vpack.c.bf16 %v1427_v19, %v1422_v18  ;;  %v1440_v25 = vld [vmem:[%s1627_s1 + $0x50] sm:$0xff] }
   0x7   :  { %1220 = vmatprep.subr.bf16.mxu1 %v1219_v20  ;;  %v1445_v26 = vld [vmem:[%s1627_s1 + $0x58] sm:$0xff]  ;;  %v1227_v27 = vpack.c.bf16 %v385_v23, %v384_v22  ;;  %v386_v28 = vld [vmem:[%s1629_s3 + $0x30] sm:$0xff]  ;;  %v1458_v31 = vld [vmem:[%s1627_s1 + $0x60] sm:$0xff] }
   0x8   :  { %1222 = vmatpush3.bf16.msra.mxu1 %v1219_v20  ;;  %v387_v29 = vld [vmem:[%s1629_s3 + $0x38] sm:$0xff]  ;;  %v1207_v30 = vpack.c.bf16 %v1445_v26, %v1440_v25  ;;  %v1463_v32 = vld [vmem:[%s1627_s1 + $0x68] sm:$0xff]  ;;  %v388_v34 = vld [vmem:[%s1629_s3 + $0x40] sm:$0xff] }
   0x9   :  { %1194 = vmatpush3.bf16.msra.mxu0 %v1191_v5  ;;  %1224 = vmatprep.subr.bf16.mxu1 %v1223_v21  ;;  %v1231_v33 = vpack.c.bf16 %v387_v29, %v386_v28  ;;  %v389_v35 = vld [vmem:[%s1629_s3 + $0x48] sm:$0xff]  ;;  %v1211_v36 = vpack.c.bf16 %v1463_v32, %v1458_v31  ;;  %v1476_v37 = vld [vmem:[%s1627_s1 + $0x70] sm:$0xff]  ;;  %v1481_v38 = vld [vmem:[%s1627_s1 + $0x78] sm:$0xff] }
   0xa   :  { %1196 = vmatprep.subr.bf16.mxu0 %v1195_v8  ;;  %v1235_v39 = vpack.c.bf16 %v389_v35, %v388_v34  ;;  %v390_v40 = vld [vmem:[%s1629_s3 + $0x50] sm:$0xff]  ;;  %v391_v41 = vld [vmem:[%s1629_s3 + $0x58] sm:$0xff]  ;;  %v1215_v42 = vpack.c.bf16 %v1481_v38, %v1476_v37  ;;  %v392_v44 = vld [vmem:[%s1629_s3 + $0x60] sm:$0xff] }
   0xb   :  { %v1239_v43 = vpack.c.bf16 %v391_v41, %v390_v40  ;;  %v393_v45 = vld [vmem:[%s1629_s3 + $0x68] sm:$0xff]  ;;  %v865_v50 = vld [vmem:[%s1628_s0 + $0x10] sm:$0xff]   ;;  %v866_v53 = vld [vmem:[%s1628_s0 + $0x18] sm:$0xff]  }
   0xc   :  { %1226 = vmatpush3.bf16.msra.mxu1 %v1223_v21  ;;  %v864_v46 = vld [vmem:[%s1628_s0 + $0x8] sm:$0xff]   ;;  %v1243_v47 = vpack.c.bf16 %v393_v45, %v392_v44  ;;  %v842_v52 = vunpack.c.l.bf16 %v865_v50  ;;  %v843_v54 = vunpack.c.h.bf16 %v865_v50  ;;  %v846_v55 = vunpack.c.l.bf16 %v866_v53  ;;  %v867_v56 = vld [vmem:[%s1628_s0 + $0x20] sm:$0xff]   ;;  %v869_v62 = vld [vmem:[%s1628_s0 + $0x30] sm:$0xff]  }
   0xd   :  { %1198 = vmatpush3.bf16.msra.mxu0 %v1195_v8  ;;  %1228 = vmatprep.subr.bf16.mxu1 %v1227_v27  ;;  %v838_v49 = vunpack.c.l.bf16 %v864_v46  ;;  %v839_v51 = vunpack.c.h.bf16 %v864_v46  ;;  %v847_v57 = vunpack.c.h.bf16 %v866_v53  ;;  %v850_v58 = vunpack.c.l.bf16 %v867_v56  ;;  %v868_v59 = vld [vmem:[%s1628_s0 + $0x28] sm:$0xff]   ;;  %v870_v5 = vld [vmem:[%s1628_s0 + $0x38] sm:$0xff]   ;;  %v394_v13 = vld [vmem:[%s1629_s3 + $0x70] sm:$0xff] }
   0xe   :  { %1200 = vmatprep.subr.bf16.mxu0 %v1199_v16  ;;  %v851_v60 = vunpack.c.h.bf16 %v867_v56  ;;  %v854_v61 = vunpack.c.l.bf16 %v868_v59  ;;  %v855_v63 = vunpack.c.h.bf16 %v868_v59  ;;  %v858_v3 = vunpack.c.l.bf16 %v869_v62  ;;  %v395_v14 = vld [vmem:[%s1629_s3 + $0x78] sm:$0xff]  ;;  %v565_v17 = vld [vmem:[%s1630_s5 + $0x8] sm:$0xff]  ;;  %v566_v20 = vld [vmem:[%s1630_s5 + $0x10] sm:$0xff] }
   0xf   :  { %v859_v8 = vunpack.c.h.bf16 %v869_v62  ;;  %v862_v9 = vunpack.c.l.bf16 %v870_v5  ;;  %v863_v12 = vunpack.c.h.bf16 %v870_v5  ;;  %v1247_v15 = vpack.c.bf16 %v395_v14, %v394_v13  ;;  %v567_v22 = vld [vmem:[%s1630_s5 + $0x18] sm:$0xff]  ;;  %v570_v29 = vld [vmem:[%s1630_s5 + $0x30] sm:$0xff]  ;;  %v572_v34 = vld [vmem:[%s1630_s5 + $0x40] sm:$0xff] }
  0x10   :  { %1230 = vmatpush3.bf16.msra.mxu1 %v1227_v27  ;;  %v1255_v23 = vpack.c.bf16 %v567_v22, %v566_v20  ;;  %v569_v27 = vld [vmem:[%s1630_s5 + $0x28] sm:$0xff]  ;;  %v575_v40 = vld [vmem:[%s1630_s5 + $0x58] sm:$0xff] }
  0x11   :  { %1202 = vmatpush3.bf16.msra.mxu0 %v1199_v16  ;;  %1232 = vmatprep.subr.bf16.mxu1 %v1231_v33  ;;  %v564_v16 = vld [vmem:[%s1630_s5] sm:$0xff]  ;;  %v573_v35 = vld [vmem:[%s1630_s5 + $0x48] sm:$0xff] }
  0x12   :  { %1204 = vmatprep.subr.bf16.mxu0 %v1203_v24  ;;  %v1251_v21 = vpack.c.bf16 %v565_v17, %v564_v16 }
  0x14   :  { %1234 = vmatpush3.bf16.msra.mxu1 %v1231_v33 }
  0x15   :  { %1206 = vmatpush3.bf16.msra.mxu0 %v1203_v24  ;;  %1236 = vmatprep.subr.bf16.mxu1 %v1235_v39  ;;  %v568_v24 = vld [vmem:[%s1630_s5 + $0x20] sm:$0xff] }
  0x16   :  { %1208 = vmatprep.subr.bf16.mxu0 %v1207_v30  ;;  %v1259_v28 = vpack.c.bf16 %v569_v27, %v568_v24 }
  0x18   :  { %1238 = vmatpush3.bf16.msra.mxu1 %v1235_v39  ;;  %v574_v39 = vld [vmem:[%s1630_s5 + $0x50] sm:$0xff] }
  0x19   :  { %1210 = vmatpush3.bf16.msra.mxu0 %v1207_v30  ;;  %1240 = vmatprep.subr.bf16.mxu1 %v1239_v43  ;;  %v571_v30 = vld [vmem:[%s1630_s5 + $0x38] sm:$0xff]  ;;  %v1271_v41 = vpack.c.bf16 %v575_v40, %v574_v39 }
  0x1a   :  { %1212 = vmatprep.subr.bf16.mxu0 %v1211_v36  ;;  %v1263_v33 = vpack.c.bf16 %v571_v30, %v570_v29 }
  0x1c   :  { %1242 = vmatpush3.bf16.msra.mxu1 %v1239_v43  ;;  %v577_v43 = vld [vmem:[%s1630_s5 + $0x68] sm:$0xff] }
  0x1d   :  { %1214 = vmatpush3.bf16.msra.mxu0 %v1211_v36  ;;  %1244 = vmatprep.subr.bf16.mxu1 %v1243_v47  ;;  %v1267_v36 = vpack.c.bf16 %v573_v35, %v572_v34 }
  0x1e   :  { %1216 = vmatprep.subr.bf16.mxu0 %v1215_v42 }
  0x20   :  { %1246 = vmatpush3.bf16.msra.mxu1 %v1243_v47 }
  0x21   :  { %1218 = vmatpush3.bf16.msra.mxu0 %v1215_v42  ;;  %1248 = vmatprep.subr.bf16.mxu1 %v1247_v15  ;;  %v576_v42 = vld [vmem:[%s1630_s5 + $0x60] sm:$0xff] }
  0x22   :  { %1252 = vmatprep.subr.bf16.mxu0 %v1251_v21  ;;  %v1275_v44 = vpack.c.bf16 %v577_v43, %v576_v42 }
  0x24   :  { %1017 = vmatmul.mubr.f32.vlgmr.msra.gmra.mrb[0].mxu0 %v835_v48  ;;  %1250 = vmatpush3.bf16.msra.mxu1 %v1247_v15 }
  0x25   :  { %1019 = vmatprep.mubr.f32.mxu0 %v838_v49  ;;  %1254 = vmatpush3.bf16.msra.mxu0 %v1251_v21 }
  0x26   :  { %1256 = vmatprep.subr.bf16.mxu0 %v1255_v23 }
  0x28   :  { %1020 = vmatmul.mubr.f32.gmra.mrb[2].mxu0 %v839_v51 }
  0x29   :  { %1022 = vmatprep.mubr.f32.mxu0 %v842_v52  ;;  %1258 = vmatpush3.bf16.msra.mxu0 %v1255_v23 }
  0x2a   :  { %1260 = vmatprep.subr.bf16.mxu0 %v1259_v28 }
  0x2c   :  { %1023 = vmatmul.mubr.f32.gmra.mrb[4].mxu0 %v843_v54 }
  0x2d   :  { %1025 = vmatprep.mubr.f32.mxu0 %v846_v55  ;;  %1262 = vmatpush3.bf16.msra.mxu0 %v1259_v28 }
  0x2e   :  { %1264 = vmatprep.subr.bf16.mxu0 %v1263_v33 }
  0x30   :  { %1026 = vmatmul.mubr.f32.gmra.mrb[6].mxu0 %v847_v57 }
  0x31   :  { %1028 = vmatprep.mubr.f32.mxu0 %v850_v58  ;;  %1266 = vmatpush3.bf16.msra.mxu0 %v1263_v33 }
  0x32   :  { %1268 = vmatprep.subr.bf16.mxu0 %v1267_v36 }
  0x34   :  { %1029 = vmatmul.mubr.f32.gmra.mrb[8].mxu0 %v851_v60 }
  0x35   :  { %1031 = vmatprep.mubr.f32.mxu0 %v854_v61  ;;  %1270 = vmatpush3.bf16.msra.mxu0 %v1267_v36 }
  0x36   :  { %1272 = vmatprep.subr.bf16.mxu0 %v1271_v41 }
  0x38   :  { %1032 = vmatmul.mubr.f32.gmra.mrb[10].mxu0 %v855_v63 }
  0x39   :  { %1034 = vmatprep.mubr.f32.mxu0 %v858_v3  ;;  %1274 = vmatpush3.bf16.msra.mxu0 %v1271_v41 }
  0x3a   :  { %1276 = vmatprep.subr.bf16.mxu0 %v1275_v44 }
  0x3c   :  { %1035 = vmatmul.mubr.f32.gmra.mrb[12].mxu0 %v859_v8 }
  0x3d   :  { %1037 = vmatprep.mubr.f32.mxu0 %v862_v9  ;;  %1278 = vmatpush3.bf16.msra.mxu0 %v1275_v44 }
  0x40   :  { %1038 = vmatmul.mubr.f32.gmra.mrb[14].mxu0 %v863_v12 }
  0xf7   :  { %v1018_v45 = vpop.f32.mrb[0].mxu0 }
  0xf8   :  { %v182_v46 = vpop.f32.mrb[1].mxu0  ;;  %v330_v48 = vadd.f32 %v1018_v45, %v1361_v1 }
  0xf9   :  { %v329_v47 = vadd.f32 %v182_v46, %v1356_v0 }
  0xfb   :  { %v1021_v49 = vpop.f32.mrb[2].mxu0  ;;  %1072 = vmatprep.mubr.f32.mxu1 %v329_v47 }
  0xfc   :  { %v192_v50 = vpop.f32.mrb[3].mxu0  ;;  %1073 = vmatmul.mubr.f32.vlgmr.msra.gmra.mrb[0].mxu1 %v330_v48  ;;  %v332_v52 = vadd.f32 %v1021_v49, %v1373_v4 }
  0xfd   :  { %v331_v51 = vadd.f32 %v192_v50, %v1366_v2 }
  0xff   :  { %v1024_v53 = vpop.f32.mrb[4].mxu0  ;;  %1075 = vmatprep.mubr.f32.mxu1 %v331_v51 }
 0x100   :  { %v202_v54 = vpop.f32.mrb[5].mxu0  ;;  %1076 = vmatmul.mubr.f32.gmra.mrb[2].mxu1 %v332_v52  ;;  %v334_v56 = vadd.f32 %v1024_v53, %v1385_v7 }
 0x101   :  { %v333_v55 = vadd.f32 %v202_v54, %v1380_v6 }
 0x103   :  { %v1027_v57 = vpop.f32.mrb[6].mxu0  ;;  %1078 = vmatprep.mubr.f32.mxu1 %v333_v55 }
 0x104   :  { %v212_v0 = vpop.f32.mrb[7].mxu0  ;;  %1079 = vmatmul.mubr.f32.gmra.mrb[4].mxu1 %v334_v56  ;;  %v336_v58 = vadd.f32 %v1027_v57, %v1402_v11 }
 0x105   :  { %v335_v1 = vadd.f32 %v212_v0, %v1397_v10 }
 0x107   :  { %v1030_v59 = vpop.f32.mrb[8].mxu0  ;;  %1081 = vmatprep.mubr.f32.mxu1 %v335_v1 }
 0x108   :  { %v222_v2 = vpop.f32.mrb[9].mxu0  ;;  %1082 = vmatmul.mubr.f32.gmra.mrb[6].mxu1 %v336_v58  ;;  %v338_v60 = vadd.f32 %v1030_v59, %v1427_v19 }
 0x109   :  { %v337_v4 = vadd.f32 %v222_v2, %v1422_v18 }
 0x10b   :  { %v1033_v61 = vpop.f32.mrb[10].mxu0  ;;  %1084 = vmatprep.mubr.f32.mxu1 %v337_v4 }
 0x10c   :  { %v232_v6 = vpop.f32.mrb[11].mxu0  ;;  %1085 = vmatmul.mubr.f32.gmra.mrb[8].mxu1 %v338_v60  ;;  %v340_v62 = vadd.f32 %v1033_v61, %v1445_v26  ;;  %v579_v26 = vld [vmem:[%s1630_s5 + $0x78] sm:$0xff]  ;;  %v1310_v61 = vmov 0.0|0.0  }
 0x10d   :  { %v339_v7 = vadd.f32 %v232_v6, %v1440_v25  ;;  %v578_v25 = vld [vmem:[%s1630_s5 + $0x70] sm:$0xff]  ;;  %1283 = vmatprep.subr.bf16.mxu1 %v1310_v61  ;;  %v1312_v6 = vmov 0.0  }
 0x10f   :  { %v1036_v63 = vpop.f32.mrb[12].mxu0  ;;  %1087 = vmatprep.mubr.f32.mxu1 %v339_v7  ;;  %v1596_v7 = vld [vmem:[%s1632_s6] ss:$0 sm:$0xff] }
 0x110   :  { %v242_v10 = vpop.f32.mrb[13].mxu0  ;;  %1088 = vmatmul.mubr.f32.gmra.mrb[10].mxu1 %v340_v62  ;;  %v342_v3 = vadd.f32 %v1036_v63, %v1463_v32  ;;  %v830_v32 = vld [vmem:[%s1631_s4] ss:$0 sm:$0xff] }
 0x111   :  { %v341_v11 = vadd.f32 %v242_v10, %v1458_v31  ;;  %v1279_v31 = vpack.c.bf16 %v579_v26, %v578_v25 }
 0x113   :  { %v1039_v5 = vpop.f32.mrb[14].mxu0  ;;  %1090 = vmatprep.mubr.f32.mxu1 %v341_v11  ;;  %1280 = vmatprep.subr.bf16.mxu0 %v1279_v31 }
 0x114   :  { %v252_v18 = vpop.f32.mrb[15].mxu0  ;;  %1091 = vmatmul.mubr.f32.gmra.mrb[12].mxu1 %v342_v3  ;;  %v344_v8 = vadd.f32 %v1039_v5, %v1481_v38  ;;  %1282 = vmatpush3.bf16.msra.mxu0 %v1279_v31 }
 0x115   :  { %v343_v19 = vadd.f32 %v252_v18, %v1476_v37 }
 0x117   :  { %1093 = vmatprep.mubr.f32.mxu1 %v343_v19 }
 0x118   :  { %1094 = vmatmul.mubr.f32.gmra.mrb[14].mxu1 %v344_v8 }
 0x119   :  { %1184 = vmatprep.mubr.msk.f32.mxu1 %vm1311_vm0, %v1312_v6 }
 0x1cf   :  { %v1074_v37 = vpop.f32.mrb[0].mxu1 }
 0x1d0   :  { %v475_v9 = vadd.f32 %v1074_v37, %v830_v32  ;;  %v469_v38 = vpop.f32.mrb[1].mxu1 }
 0x1d1   :  { %v470_v12 = vadd.f32 %v830_v32, %v469_v38 }
 0x1d2   :  { %v549_v15 = vmax.f32 %v475_v9, 0.0 }
 0x1d3   :  { %v548_v13 = vmax.f32 %v470_v12, 0.0  ;;  %v1077_v14 = vpop.f32.mrb[2].mxu1 }
 0x1d4   :  { %v485_v16 = vadd.f32 %v1077_v14, %v830_v32  ;;  %v479_v17 = vpop.f32.mrb[3].mxu1 }
 0x1d5   :  { %v480_v20 = vadd.f32 %v830_v32, %v479_v17  ;;  %1128 = vmatprep.mubr.f32.mxu0 %v548_v13 }
 0x1d6   :  { %1129 = vmatmul.mubr.f32.vlgmr.msra.gmra.mrb[16].mxu0 %v549_v15  ;;  %v551_v23 = vmax.f32 %v485_v16, 0.0 }
 0x1d7   :  { %v550_v21 = vmax.f32 %v480_v20, 0.0  ;;  %v1080_v22 = vpop.f32.mrb[4].mxu1 }
 0x1d8   :  { %v495_v24 = vadd.f32 %v1080_v22, %v830_v32  ;;  %v489_v27 = vpop.f32.mrb[5].mxu1 }
 0x1d9   :  { %v490_v28 = vadd.f32 %v830_v32, %v489_v27  ;;  %1131 = vmatprep.mubr.f32.mxu0 %v550_v21 }
 0x1da   :  { %1132 = vmatmul.mubr.f32.gmra.mrb[18].mxu0 %v551_v23  ;;  %v553_v33 = vmax.f32 %v495_v24, 0.0 }
 0x1db   :  { %v552_v29 = vmax.f32 %v490_v28, 0.0  ;;  %v1083_v30 = vpop.f32.mrb[6].mxu1 }
 0x1dc   :  { %v505_v34 = vadd.f32 %v1083_v30, %v830_v32  ;;  %v499_v35 = vpop.f32.mrb[7].mxu1 }
 0x1dd   :  { %v500_v36 = vadd.f32 %v830_v32, %v499_v35  ;;  %1134 = vmatprep.mubr.f32.mxu0 %v552_v29 }
 0x1de   :  { %1135 = vmatmul.mubr.f32.gmra.mrb[20].mxu0 %v553_v33  ;;  %v555_v41 = vmax.f32 %v505_v34, 0.0 }
 0x1df   :  { %v554_v39 = vmax.f32 %v500_v36, 0.0  ;;  %v1086_v40 = vpop.f32.mrb[8].mxu1 }
 0x1e0   :  { %v515_v42 = vadd.f32 %v1086_v40, %v830_v32  ;;  %v509_v43 = vpop.f32.mrb[9].mxu1 }
 0x1e1   :  { %v510_v44 = vadd.f32 %v830_v32, %v509_v43  ;;  %1137 = vmatprep.mubr.f32.mxu0 %v554_v39 }
 0x1e2   :  { %1138 = vmatmul.mubr.f32.gmra.mrb[22].mxu0 %v555_v41  ;;  %v557_v47 = vmax.f32 %v515_v42, 0.0 }
 0x1e3   :  { %v556_v45 = vmax.f32 %v510_v44, 0.0  ;;  %v1089_v46 = vpop.f32.mrb[10].mxu1 }
 0x1e4   :  { %v525_v48 = vadd.f32 %v1089_v46, %v830_v32  ;;  %v519_v49 = vpop.f32.mrb[11].mxu1 }
 0x1e5   :  { %v520_v50 = vadd.f32 %v830_v32, %v519_v49  ;;  %1140 = vmatprep.mubr.f32.mxu0 %v556_v45 }
 0x1e6   :  { %1141 = vmatmul.mubr.f32.gmra.mrb[24].mxu0 %v557_v47  ;;  %v559_v53 = vmax.f32 %v525_v48, 0.0 }
 0x1e7   :  { %v558_v51 = vmax.f32 %v520_v50, 0.0  ;;  %v1092_v52 = vpop.f32.mrb[12].mxu1 }
 0x1e8   :  { %v535_v54 = vadd.f32 %v1092_v52, %v830_v32  ;;  %v529_v55 = vpop.f32.mrb[13].mxu1 }
 0x1e9   :  { %v530_v56 = vadd.f32 %v830_v32, %v529_v55  ;;  %1143 = vmatprep.mubr.f32.mxu0 %v558_v51 }
 0x1ea   :  { %1144 = vmatmul.mubr.f32.gmra.mrb[26].mxu0 %v559_v53  ;;  %v561_v1 = vmax.f32 %v535_v54, 0.0 }
 0x1eb   :  { %v560_v57 = vmax.f32 %v530_v56, 0.0  ;;  %v1095_v0 = vpop.f32.mrb[14].mxu1 }
 0x1ec   :  { %v545_v58 = vadd.f32 %v1095_v0, %v830_v32  ;;  %v539_v59 = vpop.f32.mrb[15].mxu1 }
 0x1ed   :  { %v540_v2 = vadd.f32 %v830_v32, %v539_v59  ;;  %1146 = vmatprep.mubr.f32.mxu0 %v560_v57 }
 0x1ee   :  { %1147 = vmatmul.mubr.f32.gmra.mrb[28].mxu0 %v561_v1  ;;  %v563_v60 = vmax.f32 %v545_v58, 0.0  ;;  %v749_v58 = vld [vmem:[%s1633_s2] sm:$0xff] }
 0x1ef   :  { %v562_v4 = vmax.f32 %v540_v2, 0.0 }
 0x1f1   :  { %1149 = vmatprep.mubr.f32.mxu0 %v562_v4 }
 0x1f2   :  { %1150 = vmatmul.mubr.f32.gmra.mrb[30].mxu0 %v563_v60 }
 0x2a9   :  { %v1130_v62 = vpop.f32.mrb[16].mxu0 }
 0x2aa   :  { %v659_v63 = vadd.f32 %v1130_v62, %v1596_v7  ;;  %v653_v10 = vpop.f32.mrb[17].mxu0 }
 0x2ab   :  { %v654_v11 = vadd.f32 %v1596_v7, %v653_v10 }
 0x2ac   :  { %v733_v3 = vmax.f32 %v659_v63, 0.0 }
 0x2ad   :  { %v732_v5 = vmax.f32 %v654_v11, 0.0  ;;  %v1133_v18 = vpop.f32.mrb[18].mxu0 }
 0x2ae   :  { %v669_v19 = vadd.f32 %v1133_v18, %v1596_v7  ;;  %v663_v8 = vpop.f32.mrb[19].mxu0 }
 0x2af   :  { %v1284_v25 = vpack.c.bf16 %v733_v3, %v732_v5  ;;  %v664_v26 = vadd.f32 %v1596_v7, %v663_v8 }
 0x2b0   :  { %v735_v31 = vmax.f32 %v669_v19, 0.0 }
 0x2b1   :  { %v734_v32 = vmax.f32 %v664_v26, 0.0  ;;  %v1136_v37 = vpop.f32.mrb[20].mxu0  ;;  %1285 = vmatpush3.bf16.msra.mxu1 %v1284_v25 }
 0x2b2   :  { %v679_v9 = vadd.f32 %v1136_v37, %v1596_v7  ;;  %v673_v38 = vpop.f32.mrb[21].mxu0  ;;  %1286 = vmatprep.subr.bf16.mxu1 %v1310_v61 }
 0x2b3   :  { %v1287_v12 = vpack.c.bf16 %v735_v31, %v734_v32  ;;  %v674_v13 = vadd.f32 %v1596_v7, %v673_v38 }
 0x2b4   :  { %v737_v14 = vmax.f32 %v679_v9, 0.0 }
 0x2b5   :  { %v736_v15 = vmax.f32 %v674_v13, 0.0  ;;  %v1139_v16 = vpop.f32.mrb[22].mxu0  ;;  %1288 = vmatpush3.bf16.msra.mxu1 %v1287_v12 }
 0x2b6   :  { %v689_v17 = vadd.f32 %v1139_v16, %v1596_v7  ;;  %v683_v20 = vpop.f32.mrb[23].mxu0  ;;  %1289 = vmatprep.subr.bf16.mxu1 %v1310_v61 }
 0x2b7   :  { %v1290_v21 = vpack.c.bf16 %v737_v14, %v736_v15  ;;  %v684_v22 = vadd.f32 %v1596_v7, %v683_v20 }
 0x2b8   :  { %v739_v23 = vmax.f32 %v689_v17, 0.0 }
 0x2b9   :  { %v738_v24 = vmax.f32 %v684_v22, 0.0  ;;  %v1142_v27 = vpop.f32.mrb[24].mxu0  ;;  %1291 = vmatpush3.bf16.msra.mxu1 %v1290_v21 }
 0x2ba   :  { %v699_v28 = vadd.f32 %v1142_v27, %v1596_v7  ;;  %v693_v29 = vpop.f32.mrb[25].mxu0  ;;  %1292 = vmatprep.subr.bf16.mxu1 %v1310_v61 }
 0x2bb   :  { %v1293_v30 = vpack.c.bf16 %v739_v23, %v738_v24  ;;  %v694_v33 = vadd.f32 %v1596_v7, %v693_v29 }
 0x2bc   :  { %v741_v34 = vmax.f32 %v699_v28, 0.0 }
 0x2bd   :  { %v740_v35 = vmax.f32 %v694_v33, 0.0  ;;  %v1145_v36 = vpop.f32.mrb[26].mxu0  ;;  %1294 = vmatpush3.bf16.msra.mxu1 %v1293_v30 }
 0x2be   :  { %v709_v39 = vadd.f32 %v1145_v36, %v1596_v7  ;;  %v703_v40 = vpop.f32.mrb[27].mxu0  ;;  %1295 = vmatprep.subr.bf16.mxu1 %v1310_v61 }
 0x2bf   :  { %v1296_v41 = vpack.c.bf16 %v741_v34, %v740_v35  ;;  %v704_v42 = vadd.f32 %v1596_v7, %v703_v40 }
 0x2c0   :  { %v743_v43 = vmax.f32 %v709_v39, 0.0 }
 0x2c1   :  { %v742_v44 = vmax.f32 %v704_v42, 0.0  ;;  %v1148_v45 = vpop.f32.mrb[28].mxu0  ;;  %1297 = vmatpush3.bf16.msra.mxu1 %v1296_v41 }
 0x2c2   :  { %v719_v46 = vadd.f32 %v1148_v45, %v1596_v7  ;;  %v713_v47 = vpop.f32.mrb[29].mxu0  ;;  %1298 = vmatprep.subr.bf16.mxu1 %v1310_v61 }
 0x2c3   :  { %v1299_v48 = vpack.c.bf16 %v743_v43, %v742_v44  ;;  %v714_v49 = vadd.f32 %v1596_v7, %v713_v47 }
 0x2c4   :  { %v745_v50 = vmax.f32 %v719_v46, 0.0 }
 0x2c5   :  { %v744_v51 = vmax.f32 %v714_v49, 0.0  ;;  %v1151_v52 = vpop.f32.mrb[30].mxu0  ;;  %1300 = vmatpush3.bf16.msra.mxu1 %v1299_v48 }
 0x2c6   :  { %v729_v53 = vadd.f32 %v1151_v52, %v1596_v7  ;;  %v723_v54 = vpop.f32.mrb[31].mxu0  ;;  %1301 = vmatprep.subr.bf16.mxu1 %v1310_v61 }
 0x2c7   :  { %v1302_v55 = vpack.c.bf16 %v745_v50, %v744_v51  ;;  %v724_v56 = vadd.f32 %v1596_v7, %v723_v54 }
 0x2c8   :  { %v747_v57 = vmax.f32 %v729_v53, 0.0 }
 0x2c9   :  { %v746_v0 = vmax.f32 %v724_v56, 0.0  ;;  %1303 = vmatpush3.bf16.msra.mxu1 %v1302_v55 }
 0x2ca   :  { %1304 = vmatprep.subr.bf16.mxu1 %v1310_v61 }
 0x2cb   :  { %v1305_v1 = vpack.c.bf16 %v747_v57, %v746_v0 }
 0x2cd   :  { %1306 = vmatpush3.bf16.msra.mxu1 %v1305_v1 }
 0x2d0   :  { %1185 = vmatmul.mubr.f32.vlgmr.msra.gmra.mrb[16].mxu1 %v749_v58 }
 0x3a3   :  { %v816_v59 = vpop.f32.mrb[16].mxu1 }
 0x3a4   :  { %825 = vst [vmem:[%s1634_s7] sm:$0xff] %v816_v59  ;;  %v1186_v2 = vpop.f32.mrb[17].mxu1 }

</bundles_post_ra>
